<compile_context>
chip_gen: v7x
topology: tpu7x:2x2x1
jax: 0.10.0
libtpu: 0.0.40
codegen_flags: <defaults>
</compile_context>

<pallas_src>
import math

import jax
import jax.numpy as jnp
from jax.experimental import pallas as pl
from jax.experimental.pallas import tpu as pltpu

# ---- small ViT config (config.hidden_size etc.) ----
HIDDEN = 32
NUM_HEADS = 4
HEAD_DIM = HIDDEN // NUM_HEADS
MLP_DIM = 64
NUM_LAYERS = 2
PATCH = 4
IN_CHANNELS = 3
IMG_SIZE = 16
N_PATCHES = (IMG_SIZE // PATCH) ** 2
SEQ = N_PATCHES + 1          # 17 (+1 classifier token)
SEQ_PAD = 24                 # padded to a sublane multiple of 8
LN_EPS = 1e-6
FEAT = IN_CHANNELS * PATCH * PATCH

# packed weight column layout: [ Wqkv | Wo | W1 | W2^T ]
QKV_C0, QKV_C1 = 0, 3 * HIDDEN
WO_C0, WO_C1 = QKV_C1, QKV_C1 + HIDDEN
W1_C0, W1_C1 = WO_C1, WO_C1 + MLP_DIM
W2T_C0, W2T_C1 = W1_C1, W1_C1 + MLP_DIM
WBIG_COLS = W2T_C1           # 256

# packed bias/LN-vector layout: rows [ln1_g, ln1_b, bqkv, bo, ln2_g, ln2_b, b1, b2]
N_VEC = 8
VEC_W = 128


# ---------------- in-kernel helpers ----------------
def _layer_norm(x, g, b):
    mu = jnp.mean(x, axis=-1, keepdims=True)
    var = jnp.mean((x - mu) ** 2, axis=-1, keepdims=True)
    return (x - mu) * jax.lax.rsqrt(var + LN_EPS) * g + b


def _gelu_exact(x):
    # torch.nn.functional.gelu default = exact (erf) gelu
    return 0.5 * x * (1.0 + jax.lax.erf(x * 0.7071067811865476))


# ---------------- the fused kernel (one grid step = batch_block elements) -------------
def make_fused_kernel(batch_block):
    f32, bf16 = jnp.float32, jnp.bfloat16

    def kernel(patches_ref, w_patch_ref, extra_ref, w_big_ref, vecs_ref, out_ref):
        # per-head disjoint lane masks (hoisted once; reused by every layer / element)
        lane = jax.lax.broadcasted_iota(jnp.int32, (1, HIDDEN), 1)
        head_masks = [
            ((lane >= n * HEAD_DIM) & (lane < (n + 1) * HEAD_DIM)).astype(f32)
            for n in range(NUM_HEADS)
        ]
        # additive key-padding bias: kills the SEQ_PAD - SEQ zero-padded key columns
        key_lane = jax.lax.broadcasted_iota(jnp.int32, (1, SEQ_PAD), 1)
        key_bias = jnp.where(key_lane < SEQ, 0.0, -1e30).astype(f32)

        # --- Embeddings: one (rows, FEAT) @ (FEAT, H) bf16 matmul for the whole block ---
        x = jnp.dot(patches_ref[...].astype(bf16), w_patch_ref[...],
                    preferred_element_type=f32) + extra_ref[...]

        # --- Encoder blocks (static unroll; weights stacked on a leading layer axis) ---
        for l in range(NUM_LAYERS):
            wb = w_big_ref[l]                       # (H, 256) bf16
            vl = vecs_ref[l]                        # (N_VEC, 128) f32
            ln1g, ln1b = vl[0:1, :HIDDEN], vl[1:2, :HIDDEN]
            bqkv = vl[2:3, :3 * HIDDEN]
            bo = vl[3:4, :HIDDEN]
            ln2g, ln2b = vl[4:5, :HIDDEN], vl[5:6, :HIDDEN]
            b1 = vl[6:7, :MLP_DIM]
            b2 = vl[7:8, :HIDDEN]

            # ---- attention sub-block (pre-LN), token-parallel over the whole block ----
            h = x
            xn = _layer_norm(x, ln1g, ln1b)
            # fused QKV projection (1/sqrt(d) already folded into the Q weights/bias)
            qkv = jnp.dot(xn.astype(bf16), wb[:, QKV_C0:QKV_C1],
                          preferred_element_type=f32) + bqkv            # (rows, 3H)

            ctx_parts = []
            for bidx in range(batch_block):
                r0 = bidx * SEQ_PAD                                      # sublane-aligned
                qkv_b = qkv[r0:r0 + SEQ_PAD, :]
                v_b = qkv_b[:, 2 * HIDDEN:3 * HIDDEN].astype(bf16)       # (SEQ_PAD, H)
                ctx_b = jnp.zeros((SEQ_PAD, HIDDEN), f32)
                for n in range(NUM_HEADS):
                    c0 = n * HEAD_DIM
                    qh = qkv_b[:, c0:c0 + HEAD_DIM].astype(bf16)
                    kh = qkv_b[:, HIDDEN + c0:HIDDEN + c0 + HEAD_DIM].astype(bf16)
                    # Q @ K^T with the transpose folded into the contraction
                    s = jax.lax.dot_general(
                        qh, kh, dimension_numbers=(((1,), (1,)), ((), ())),
                        preferred_element_type=f32)                      # (SEQ_PAD, SEQ_PAD)
                    s = s + key_bias
                    s = s - jnp.max(s, axis=-1, keepdims=True)
                    p = jnp.exp(s)
                    p = p / jnp.sum(p, axis=-1, keepdims=True)           # exact divide
                    # full-width P @ V; the disjoint lane mask selects V[:, c0:c0+HD]
                    # columns (free under 128 lanes; avoids lane-shifting narrow results)
                    ctx_b = ctx_b + jnp.dot(p.astype(bf16), v_b,
                                            preferred_element_type=f32) * head_masks[n]
                ctx_parts.append(ctx_b)
            ctx = ctx_parts[0] if batch_block == 1 else jnp.concatenate(ctx_parts, axis=0)

            # single output projection for all heads / all batch elements in the block
            attn = jnp.dot(ctx.astype(bf16), wb[:, WO_C0:WO_C1],
                           preferred_element_type=f32) + bo
            x = attn + h                                                 # residual 1

            # ---- MLP sub-block (pre-LN) ----
            h2 = x
            xn2 = _layer_norm(x, ln2g, ln2b)
            y = jnp.dot(xn2.astype(bf16), wb[:, W1_C0:W1_C1],
                        preferred_element_type=f32) + b1
            y = _gelu_exact(y)
            y = jax.lax.dot_general(
                y.astype(bf16), wb[:, W2T_C0:W2T_C1],                    # stored as W2^T
                dimension_numbers=(((1,), (1,)), ((), ())),
                preferred_element_type=f32) + b2
            x = y + h2                                                   # residual 2

        # --- final encoder LayerNorm (packed as pseudo-layer NUM_LAYERS) ---
        ve = vecs_ref[NUM_LAYERS]
        out_ref[...] = _layer_norm(x, ve[0:1, :HIDDEN], ve[1:2, :HIDDEN])

    return kernel


# ---------------- parameters (deterministic, in-script) ----------------
def init_params(key):
    keys = jax.random.split(key, 2 + NUM_LAYERS)

    def nrm(k, shape, scale=0.02):
        return scale * jax.random.normal(k, shape, dtype=jnp.float32)

    params = {
        # conv weight (HIDDEN, C, p, p) pre-flattened (c, kh, kw) and transposed -> (F, HIDDEN)
        "w_patch": nrm(keys[0], (FEAT, HIDDEN)),
        "b_patch": nrm(keys[1], (1, HIDDEN)),
        # reference __init__ initializes these to zeros
        "pos": jnp.zeros((SEQ, HIDDEN), jnp.float32),
        "cls": jnp.zeros((1, HIDDEN), jnp.float32),
        "enc_ln_g": jnp.ones((1, HIDDEN), jnp.float32),
        "enc_ln_b": jnp.zeros((1, HIDDEN), jnp.float32),
    }

    layers = []
    for li in range(NUM_LAYERS):
        lk = jax.random.split(keys[2 + li], 10)
        layers.append({
            "ln1_g": jnp.ones((1, HIDDEN), jnp.float32),
            "ln1_b": jnp.zeros((1, HIDDEN), jnp.float32),
            # nn.Linear weights are (out, in); stored pre-transposed as (in, out)
            "wq": nrm(lk[0], (HIDDEN, HIDDEN)), "bq": nrm(lk[1], (1, HIDDEN)),
            "wk": nrm(lk[2], (HIDDEN, HIDDEN)), "bk": nrm(lk[3], (1, HIDDEN)),
            "wv": nrm(lk[4], (HIDDEN, HIDDEN)), "bv": nrm(lk[5], (1, HIDDEN)),
            "wo": nrm(lk[6], (HIDDEN, HIDDEN)), "bo": nrm(lk[7], (1, HIDDEN)),
            "ln2_g": jnp.ones((1, HIDDEN), jnp.float32),
            "ln2_b": jnp.zeros((1, HIDDEN), jnp.float32),
            "w1": nrm(lk[8], (HIDDEN, MLP_DIM)),
            "b1": jnp.zeros((1, MLP_DIM), jnp.float32),   # ~N(0, 1e-6) in reference
            "w2": nrm(lk[9], (MLP_DIM, HIDDEN)),
            "b2": jnp.zeros((1, HIDDEN), jnp.float32),
        })
    params["layers"] = layers
    return params


def _pack_params(params):
    """Pack all per-layer weights into one bf16 (L, H, 256) array and all LN/bias
    vectors into one f32 (L+1, 8, 128) array; fold the 1/sqrt(head_dim) attention
    scale into the Q weights/bias (algebraically exact)."""
    scale = 1.0 / math.sqrt(HEAD_DIM)
    vecs = jnp.zeros((NUM_LAYERS + 1, N_VEC, VEC_W), jnp.float32)
    w_big = []
    for l, lp in enumerate(params["layers"]):
        vecs = vecs.at[l, 0, :HIDDEN].set(lp["ln1_g"][0])
        vecs = vecs.at[l, 1, :HIDDEN].set(lp["ln1_b"][0])
        bqkv = jnp.concatenate([lp["bq"][0] * scale, lp["bk"][0], lp["bv"][0]])
        vecs = vecs.at[l, 2, :3 * HIDDEN].set(bqkv)
        vecs = vecs.at[l, 3, :HIDDEN].set(lp["bo"][0])
        vecs = vecs.at[l, 4, :HIDDEN].set(lp["ln2_g"][0])
        vecs = vecs.at[l, 5, :HIDDEN].set(lp["ln2_b"][0])
        vecs = vecs.at[l, 6, :MLP_DIM].set(lp["b1"][0])
        vecs = vecs.at[l, 7, :HIDDEN].set(lp["b2"][0])
        wqkv = jnp.concatenate([lp["wq"] * scale, lp["wk"], lp["wv"]], axis=1)  # (H, 3H)
        w_big.append(jnp.concatenate([wqkv, lp["wo"], lp["w1"], lp["w2"].T], axis=1))
    vecs = vecs.at[NUM_LAYERS, 0, :HIDDEN].set(params["enc_ln_g"][0])
    vecs = vecs.at[NUM_LAYERS, 1, :HIDDEN].set(params["enc_ln_b"][0])
    w_big = jnp.stack(w_big, axis=0).astype(jnp.bfloat16)                # (L, H, 256)
    return w_big, vecs


# ---------------- forward (Transformer.forward) ----------------
def transformer_forward(input_ids, params):
    # input_ids: image tensor (B, C, IMG, IMG), NCHW like PyTorch
    B, C, Hm, Wm = input_ids.shape
    gh, gw = Hm // PATCH, Wm // PATCH

    # --- glue: patchify so the stride=kernel Conv2d becomes a matmul ---
    patches = input_ids.reshape(B, C, gh, PATCH, gw, PATCH)
    patches = patches.transpose(0, 2, 4, 1, 3, 5).reshape(B, gh * gw, FEAT)
    # row 0: zero feature row for the cls-token slot (falls out of the same matmul);
    # rows SEQ..SEQ_PAD-1: zero sublane padding (masked out of attention in-kernel).
    patches = jnp.concatenate(
        [jnp.zeros((B, 1, FEAT), patches.dtype), patches,
         jnp.zeros((B, SEQ_PAD - SEQ, FEAT), patches.dtype)], axis=1)    # (B, SEQ_PAD, F)
    patches_flat = patches.reshape(B * SEQ_PAD, FEAT)

    # 2 parallel grid blocks when B is even (feeds both v7x TensorCores); the batch
    # elements inside each block are flattened into the sublane axis.
    n_blocks = 2 if (B >= 2 and B % 2 == 0) else 1
    batch_block = B // n_blocks
    rows = batch_block * SEQ_PAD

    # additive term per position: row0 = cls + pos[0]; rows 1.. = conv bias + pos[1:]
    # TODO(synk): reference Embeddings hardcodes .expand(bs, 1, 768) for the cls token;
    #             we broadcast to hidden_size instead (768 only works when hidden_size==768).
    extra = jnp.concatenate(
        [params["cls"] + params["pos"][0:1],
         params["b_patch"] + params["pos"][1:],
         jnp.zeros((SEQ_PAD - SEQ, HIDDEN), jnp.float32)], axis=0)       # (SEQ_PAD, H)
    extra = jnp.tile(extra, (batch_block, 1))                            # (rows, H)

    w_big, vecs = _pack_params(params)
    w_patch = params["w_patch"].astype(jnp.bfloat16)

    # advisory cost estimate for the fused call
    sp = SEQ_PAD
    flops = 2 * B * sp * FEAT * HIDDEN
    per_layer = (2 * sp * HIDDEN * 3 * HIDDEN
                 + NUM_HEADS * (2 * sp * sp * HEAD_DIM + 2 * sp * sp * HIDDEN)
                 + 2 * sp * HIDDEN * HIDDEN
                 + 2 * sp * HIDDEN * MLP_DIM
                 + 2 * sp * MLP_DIM * HIDDEN)
    flops += B * NUM_LAYERS * per_layer
    transcendentals = B * (NUM_LAYERS * (NUM_HEADS * sp * sp + sp * MLP_DIM)
                           + sp * (2 * NUM_LAYERS + 1))
    bytes_accessed = (patches_flat.size * 4 + w_patch.size * 2 + extra.size * 4
                      + w_big.size * 2 + vecs.size * 4 + B * sp * HIDDEN * 4)

    out_flat = pl.pallas_call(
        make_fused_kernel(batch_block),
        out_shape=jax.ShapeDtypeStruct((B * SEQ_PAD, HIDDEN), jnp.float32),
        grid_spec=pltpu.PrefetchScalarGridSpec(
            num_scalar_prefetch=0,
            grid=(n_blocks,),
            in_specs=[
                pl.BlockSpec((rows, FEAT), lambda i: (i, 0)),
                pl.BlockSpec((FEAT, HIDDEN), lambda i: (0, 0)),
                pl.BlockSpec((rows, HIDDEN), lambda i: (0, 0)),
                pl.BlockSpec((NUM_LAYERS, HIDDEN, WBIG_COLS), lambda i: (0, 0, 0)),
                pl.BlockSpec((NUM_LAYERS + 1, N_VEC, VEC_W), lambda i: (0, 0, 0)),
            ],
            out_specs=pl.BlockSpec((rows, HIDDEN), lambda i: (i, 0)),
        ),
        compiler_params=pltpu.CompilerParams(dimension_semantics=("parallel",)),
        cost_estimate=pl.CostEstimate(flops=int(flops),
                                      transcendentals=int(transcendentals),
                                      bytes_accessed=int(bytes_accessed)),
    )(patches_flat, w_patch, extra, w_big, vecs)

    encoded = out_flat.reshape(B, SEQ_PAD, HIDDEN)[:, :SEQ, :]
    attn_weights = []   # vis=False -> no attention weights collected
    return encoded, attn_weights


if __name__ == "__main__":
    key = jax.random.PRNGKey(0)
    k_img, k_par = jax.random.split(key)
    img = jax.random.normal(k_img, (2, IN_CHANNELS, IMG_SIZE, IMG_SIZE), jnp.float32)
    params = init_params(k_par)

    fwd = jax.jit(transformer_forward)
    encoded, attn_w = fwd(img, params)
    encoded = jax.block_until_ready(encoded)

    assert encoded.shape == (2, SEQ, HIDDEN), encoded.shape
    assert attn_w == []
    print("KERNEL_OK")
</pallas_src>

<mosaic_0001>
module attributes {stable_mosaic.version = 11 : i64} {
  func.func @kernel(%arg0: i32, %arg1: memref<24x48xf32, #tpu.memory_space<vmem>>, %arg2: memref<48x32xbf16, #tpu.memory_space<vmem>>, %arg3: memref<24x32xf32, #tpu.memory_space<vmem>>, %arg4: memref<2x32x256xbf16, #tpu.memory_space<vmem>>, %arg5: memref<3x8x128xf32, #tpu.memory_space<vmem>>, %arg6: memref<24x32xf32, #tpu.memory_space<vmem>>) attributes {dimension_semantics = [#tpu.dimension_semantics<parallel>], iteration_bounds = array<i64: 2>, scalar_prefetch = 0 : i64, scratch_operands = 0 : i64, tpu.core_type = #tpu.core_type<tc>, window_params = [{transform_indices = @transform_0, window_bounds = array<i64: 24, 48>}, {pipeline_mode = #tpu.pipeline_mode<synchronous>, transform_indices = @transform_1, window_bounds = array<i64: 48, 32>}, {pipeline_mode = #tpu.pipeline_mode<synchronous>, transform_indices = @transform_2, window_bounds = array<i64: 24, 32>}, {pipeline_mode = #tpu.pipeline_mode<synchronous>, transform_indices = @transform_3, window_bounds = array<i64: 2, 32, 256>}, {pipeline_mode = #tpu.pipeline_mode<synchronous>, transform_indices = @transform_4, window_bounds = array<i64: 3, 8, 128>}, {transform_indices = @transform_5, window_bounds = array<i64: 24, 32>}]} {
    %0 = tpu.iota {dimensions = array<i32: 1>} : vector<1x32xi32>
    %c0_i32 = arith.constant 0 : i32
    %1 = vector.broadcast %c0_i32 : i32 to vector<1x32xi32>
    %2 = arith.cmpi sge, %0, %1 : vector<1x32xi32>
    %c8_i32 = arith.constant 8 : i32
    %3 = vector.broadcast %c8_i32 : i32 to vector<1x32xi32>
    %4 = arith.cmpi slt, %0, %3 : vector<1x32xi32>
    %5 = arith.andi %2, %4 : vector<1x32xi1>
    %6 = arith.extui %5 : vector<1x32xi1> to vector<1x32xi32>
    %7 = arith.sitofp %6 : vector<1x32xi32> to vector<1x32xf32>
    %c8_i32_0 = arith.constant 8 : i32
    %8 = vector.broadcast %c8_i32_0 : i32 to vector<1x32xi32>
    %9 = arith.cmpi sge, %0, %8 : vector<1x32xi32>
    %c16_i32 = arith.constant 16 : i32
    %10 = vector.broadcast %c16_i32 : i32 to vector<1x32xi32>
    %11 = arith.cmpi slt, %0, %10 : vector<1x32xi32>
    %12 = arith.andi %9, %11 : vector<1x32xi1>
    %13 = arith.extui %12 : vector<1x32xi1> to vector<1x32xi32>
    %14 = arith.sitofp %13 : vector<1x32xi32> to vector<1x32xf32>
    %c16_i32_1 = arith.constant 16 : i32
    %15 = vector.broadcast %c16_i32_1 : i32 to vector<1x32xi32>
    %16 = arith.cmpi sge, %0, %15 : vector<1x32xi32>
    %c24_i32 = arith.constant 24 : i32
    %17 = vector.broadcast %c24_i32 : i32 to vector<1x32xi32>
    %18 = arith.cmpi slt, %0, %17 : vector<1x32xi32>
    %19 = arith.andi %16, %18 : vector<1x32xi1>
    %20 = arith.extui %19 : vector<1x32xi1> to vector<1x32xi32>
    %21 = arith.sitofp %20 : vector<1x32xi32> to vector<1x32xf32>
    %c24_i32_2 = arith.constant 24 : i32
    %22 = vector.broadcast %c24_i32_2 : i32 to vector<1x32xi32>
    %23 = arith.cmpi sge, %0, %22 : vector<1x32xi32>
    %c32_i32 = arith.constant 32 : i32
    %24 = vector.broadcast %c32_i32 : i32 to vector<1x32xi32>
    %25 = arith.cmpi slt, %0, %24 : vector<1x32xi32>
    %26 = arith.andi %23, %25 : vector<1x32xi1>
    %27 = arith.extui %26 : vector<1x32xi1> to vector<1x32xi32>
    %28 = arith.sitofp %27 : vector<1x32xi32> to vector<1x32xf32>
    %29 = tpu.iota {dimensions = array<i32: 1>} : vector<1x24xi32>
    %c17_i32 = arith.constant 17 : i32
    %30 = vector.broadcast %c17_i32 : i32 to vector<1x24xi32>
    %31 = arith.cmpi slt, %29, %30 : vector<1x24xi32>
    %cst = arith.constant 0.000000e+00 : f32
    %cst_3 = arith.constant -1.000000e+30 : f32
    %32 = vector.broadcast %cst : f32 to vector<1x24xf32>
    %33 = vector.broadcast %cst_3 : f32 to vector<1x24xf32>
    %34 = arith.select %31, %32, %33 : vector<1x24xi1>, vector<1x24xf32>
    %c0 = arith.constant 0 : index
    %c0_4 = arith.constant 0 : index
    %35 = vector.load %arg1[%c0, %c0_4] : memref<24x48xf32, #tpu.memory_space<vmem>>, vector<24x48xf32>
    %36 = arith.truncf %35 : vector<24x48xf32> to vector<24x48xbf16>
    %c0_5 = arith.constant 0 : index
    %c0_6 = arith.constant 0 : index
    %37 = vector.load %arg2[%c0_5, %c0_6] : memref<48x32xbf16, #tpu.memory_space<vmem>>, vector<48x32xbf16>
    %cst_7 = arith.constant dense<0.000000e+00> : vector<24x32xf32>
    %38 = tpu.matmul %36, %37, %cst_7 {dimension_numbers = #tpu.dot_dimension_numbers<[1], [0], [0], [1], [0, 0, 1, 1], [], []>} : vector<24x48xbf16>, vector<48x32xbf16>, vector<24x32xf32> -> vector<24x32xf32>
    %c0_8 = arith.constant 0 : index
    %c0_9 = arith.constant 0 : index
    %39 = vector.load %arg3[%c0_8, %c0_9] : memref<24x32xf32, #tpu.memory_space<vmem>>, vector<24x32xf32>
    %40 = arith.addf %38, %39 : vector<24x32xf32>
    %c0_10 = arith.constant 0 : index
    %c0_11 = arith.constant 0 : index
    %c0_12 = arith.constant 0 : index
    %41 = vector.load %arg4[%c0_10, %c0_11, %c0_12] : memref<2x32x256xbf16, #tpu.memory_space<vmem>>, vector<1x32x256xbf16>
    %42 = vector.shape_cast %41 : vector<1x32x256xbf16> to vector<32x256xbf16>
    %c0_13 = arith.constant 0 : index
    %c0_14 = arith.constant 0 : index
    %c0_15 = arith.constant 0 : index
    %43 = vector.load %arg5[%c0_13, %c0_14, %c0_15] : memref<3x8x128xf32, #tpu.memory_space<vmem>>, vector<1x8x128xf32>
    %44 = vector.shape_cast %43 : vector<1x8x128xf32> to vector<8x128xf32>
    %45 = vector.extract_strided_slice %44 {offsets = [0, 0], sizes = [1, 32], strides = [1, 1]} : vector<8x128xf32> to vector<1x32xf32>
    %46 = vector.extract_strided_slice %44 {offsets = [1, 0], sizes = [1, 32], strides = [1, 1]} : vector<8x128xf32> to vector<1x32xf32>
    %47 = vector.extract_strided_slice %44 {offsets = [2, 0], sizes = [1, 96], strides = [1, 1]} : vector<8x128xf32> to vector<1x96xf32>
    %48 = vector.extract_strided_slice %44 {offsets = [3, 0], sizes = [1, 32], strides = [1, 1]} : vector<8x128xf32> to vector<1x32xf32>
    %49 = vector.extract_strided_slice %44 {offsets = [4, 0], sizes = [1, 32], strides = [1, 1]} : vector<8x128xf32> to vector<1x32xf32>
    %50 = vector.extract_strided_slice %44 {offsets = [5, 0], sizes = [1, 32], strides = [1, 1]} : vector<8x128xf32> to vector<1x32xf32>
    %51 = vector.extract_strided_slice %44 {offsets = [6, 0], sizes = [1, 64], strides = [1, 1]} : vector<8x128xf32> to vector<1x64xf32>
    %52 = vector.extract_strided_slice %44 {offsets = [7, 0], sizes = [1, 32], strides = [1, 1]} : vector<8x128xf32> to vector<1x32xf32>
    %cst_16 = arith.constant dense<0.000000e+00> : vector<24xf32>
    %53 = vector.multi_reduction <add>, %40, %cst_16 [1] : vector<24x32xf32> to vector<24xf32>
    %54 = vector.shape_cast %53 : vector<24xf32> to vector<24x1xf32>
    %cst_17 = arith.constant 3.200000e+01 : f32
    %55 = vector.broadcast %cst_17 : f32 to vector<24x1xf32>
    %56 = arith.divf %54, %55 : vector<24x1xf32>
    %57 = vector.broadcast %56 : vector<24x1xf32> to vector<24x32xf32>
    %58 = arith.subf %40, %57 : vector<24x32xf32>
    %59 = arith.mulf %58, %58 : vector<24x32xf32>
    %cst_18 = arith.constant dense<0.000000e+00> : vector<24xf32>
    %60 = vector.multi_reduction <add>, %59, %cst_18 [1] : vector<24x32xf32> to vector<24xf32>
    %61 = vector.shape_cast %60 : vector<24xf32> to vector<24x1xf32>
    %cst_19 = arith.constant 3.200000e+01 : f32
    %62 = vector.broadcast %cst_19 : f32 to vector<24x1xf32>
    %63 = arith.divf %61, %62 : vector<24x1xf32>
    %64 = vector.broadcast %56 : vector<24x1xf32> to vector<24x32xf32>
    %65 = arith.subf %40, %64 : vector<24x32xf32>
    %cst_20 = arith.constant 9.99999997E-7 : f32
    %66 = vector.broadcast %cst_20 : f32 to vector<24x1xf32>
    %67 = arith.addf %63, %66 : vector<24x1xf32>
    %68 = math.rsqrt %67 : vector<24x1xf32>
    %69 = vector.broadcast %68 : vector<24x1xf32> to vector<24x32xf32>
    %70 = arith.mulf %65, %69 : vector<24x32xf32>
    %71 = vector.broadcast %45 : vector<1x32xf32> to vector<24x32xf32>
    %72 = arith.mulf %70, %71 : vector<24x32xf32>
    %73 = vector.broadcast %46 : vector<1x32xf32> to vector<24x32xf32>
    %74 = arith.addf %72, %73 : vector<24x32xf32>
    %75 = arith.truncf %74 : vector<24x32xf32> to vector<24x32xbf16>
    %76 = vector.extract_strided_slice %42 {offsets = [0, 0], sizes = [32, 96], strides = [1, 1]} : vector<32x256xbf16> to vector<32x96xbf16>
    %cst_21 = arith.constant dense<0.000000e+00> : vector<24x96xf32>
    %77 = tpu.matmul %75, %76, %cst_21 {dimension_numbers = #tpu.dot_dimension_numbers<[1], [0], [0], [1], [0, 0, 1, 1], [], []>} : vector<24x32xbf16>, vector<32x96xbf16>, vector<24x96xf32> -> vector<24x96xf32>
    %78 = vector.broadcast %47 : vector<1x96xf32> to vector<24x96xf32>
    %79 = arith.addf %77, %78 : vector<24x96xf32>
    %80 = vector.extract_strided_slice %79 {offsets = [0, 64], sizes = [24, 32], strides = [1, 1]} : vector<24x96xf32> to vector<24x32xf32>
    %81 = arith.truncf %80 : vector<24x32xf32> to vector<24x32xbf16>
    %cst_22 = arith.constant 0.000000e+00 : f32
    %82 = vector.broadcast %cst_22 : f32 to vector<24x32xf32>
    %83 = vector.extract_strided_slice %79 {offsets = [0, 0], sizes = [24, 8], strides = [1, 1]} : vector<24x96xf32> to vector<24x8xf32>
    %84 = arith.truncf %83 : vector<24x8xf32> to vector<24x8xbf16>
    %85 = vector.extract_strided_slice %79 {offsets = [0, 32], sizes = [24, 8], strides = [1, 1]} : vector<24x96xf32> to vector<24x8xf32>
    %86 = arith.truncf %85 : vector<24x8xf32> to vector<24x8xbf16>
    %cst_23 = arith.constant dense<0.000000e+00> : vector<24x24xf32>
    %87 = tpu.matmul %84, %86, %cst_23 {dimension_numbers = #tpu.dot_dimension_numbers<[1], [1], [0], [0], [0, 0, 1, 0], [], []>} : vector<24x8xbf16>, vector<24x8xbf16>, vector<24x24xf32> -> vector<24x24xf32>
    %88 = vector.broadcast %34 : vector<1x24xf32> to vector<24x24xf32>
    %89 = arith.addf %87, %88 : vector<24x24xf32>
    %cst_24 = arith.constant dense<0xFF800000> : vector<24xf32>
    %90 = vector.multi_reduction <maximumf>, %89, %cst_24 [1] : vector<24x24xf32> to vector<24xf32>
    %91 = vector.shape_cast %90 : vector<24xf32> to vector<24x1xf32>
    %92 = vector.broadcast %91 : vector<24x1xf32> to vector<24x24xf32>
    %93 = arith.subf %89, %92 : vector<24x24xf32>
    %94 = math.exp %93 : vector<24x24xf32>
    %cst_25 = arith.constant dense<0.000000e+00> : vector<24xf32>
    %95 = vector.multi_reduction <add>, %94, %cst_25 [1] : vector<24x24xf32> to vector<24xf32>
    %96 = vector.shape_cast %95 : vector<24xf32> to vector<24x1xf32>
    %97 = vector.broadcast %96 : vector<24x1xf32> to vector<24x24xf32>
    %98 = arith.divf %94, %97 : vector<24x24xf32>
    %99 = arith.truncf %98 : vector<24x24xf32> to vector<24x24xbf16>
    %cst_26 = arith.constant dense<0.000000e+00> : vector<24x32xf32>
    %100 = tpu.matmul %99, %81, %cst_26 {dimension_numbers = #tpu.dot_dimension_numbers<[1], [0], [0], [1], [0, 0, 1, 1], [], []>} : vector<24x24xbf16>, vector<24x32xbf16>, vector<24x32xf32> -> vector<24x32xf32>
    %101 = vector.broadcast %7 : vector<1x32xf32> to vector<24x32xf32>
    %102 = arith.mulf %100, %101 : vector<24x32xf32>
    %103 = arith.addf %82, %102 : vector<24x32xf32>
    %104 = vector.extract_strided_slice %79 {offsets = [0, 8], sizes = [24, 8], strides = [1, 1]} : vector<24x96xf32> to vector<24x8xf32>
    %105 = arith.truncf %104 : vector<24x8xf32> to vector<24x8xbf16>
    %106 = vector.extract_strided_slice %79 {offsets = [0, 40], sizes = [24, 8], strides = [1, 1]} : vector<24x96xf32> to vector<24x8xf32>
    %107 = arith.truncf %106 : vector<24x8xf32> to vector<24x8xbf16>
    %cst_27 = arith.constant dense<0.000000e+00> : vector<24x24xf32>
    %108 = tpu.matmul %105, %107, %cst_27 {dimension_numbers = #tpu.dot_dimension_numbers<[1], [1], [0], [0], [0, 0, 1, 0], [], []>} : vector<24x8xbf16>, vector<24x8xbf16>, vector<24x24xf32> -> vector<24x24xf32>
    %109 = vector.broadcast %34 : vector<1x24xf32> to vector<24x24xf32>
    %110 = arith.addf %108, %109 : vector<24x24xf32>
    %cst_28 = arith.constant dense<0xFF800000> : vector<24xf32>
    %111 = vector.multi_reduction <maximumf>, %110, %cst_28 [1] : vector<24x24xf32> to vector<24xf32>
    %112 = vector.shape_cast %111 : vector<24xf32> to vector<24x1xf32>
    %113 = vector.broadcast %112 : vector<24x1xf32> to vector<24x24xf32>
    %114 = arith.subf %110, %113 : vector<24x24xf32>
    %115 = math.exp %114 : vector<24x24xf32>
    %cst_29 = arith.constant dense<0.000000e+00> : vector<24xf32>
    %116 = vector.multi_reduction <add>, %115, %cst_29 [1] : vector<24x24xf32> to vector<24xf32>
    %117 = vector.shape_cast %116 : vector<24xf32> to vector<24x1xf32>
    %118 = vector.broadcast %117 : vector<24x1xf32> to vector<24x24xf32>
    %119 = arith.divf %115, %118 : vector<24x24xf32>
    %120 = arith.truncf %119 : vector<24x24xf32> to vector<24x24xbf16>
    %cst_30 = arith.constant dense<0.000000e+00> : vector<24x32xf32>
    %121 = tpu.matmul %120, %81, %cst_30 {dimension_numbers = #tpu.dot_dimension_numbers<[1], [0], [0], [1], [0, 0, 1, 1], [], []>} : vector<24x24xbf16>, vector<24x32xbf16>, vector<24x32xf32> -> vector<24x32xf32>
    %122 = vector.broadcast %14 : vector<1x32xf32> to vector<24x32xf32>
    %123 = arith.mulf %121, %122 : vector<24x32xf32>
    %124 = arith.addf %103, %123 : vector<24x32xf32>
    %125 = vector.extract_strided_slice %79 {offsets = [0, 16], sizes = [24, 8], strides = [1, 1]} : vector<24x96xf32> to vector<24x8xf32>
    %126 = arith.truncf %125 : vector<24x8xf32> to vector<24x8xbf16>
    %127 = vector.extract_strided_slice %79 {offsets = [0, 48], sizes = [24, 8], strides = [1, 1]} : vector<24x96xf32> to vector<24x8xf32>
    %128 = arith.truncf %127 : vector<24x8xf32> to vector<24x8xbf16>
    %cst_31 = arith.constant dense<0.000000e+00> : vector<24x24xf32>
    %129 = tpu.matmul %126, %128, %cst_31 {dimension_numbers = #tpu.dot_dimension_numbers<[1], [1], [0], [0], [0, 0, 1, 0], [], []>} : vector<24x8xbf16>, vector<24x8xbf16>, vector<24x24xf32> -> vector<24x24xf32>
    %130 = vector.broadcast %34 : vector<1x24xf32> to vector<24x24xf32>
    %131 = arith.addf %129, %130 : vector<24x24xf32>
    %cst_32 = arith.constant dense<0xFF800000> : vector<24xf32>
    %132 = vector.multi_reduction <maximumf>, %131, %cst_32 [1] : vector<24x24xf32> to vector<24xf32>
    %133 = vector.shape_cast %132 : vector<24xf32> to vector<24x1xf32>
    %134 = vector.broadcast %133 : vector<24x1xf32> to vector<24x24xf32>
    %135 = arith.subf %131, %134 : vector<24x24xf32>
    %136 = math.exp %135 : vector<24x24xf32>
    %cst_33 = arith.constant dense<0.000000e+00> : vector<24xf32>
    %137 = vector.multi_reduction <add>, %136, %cst_33 [1] : vector<24x24xf32> to vector<24xf32>
    %138 = vector.shape_cast %137 : vector<24xf32> to vector<24x1xf32>
    %139 = vector.broadcast %138 : vector<24x1xf32> to vector<24x24xf32>
    %140 = arith.divf %136, %139 : vector<24x24xf32>
    %141 = arith.truncf %140 : vector<24x24xf32> to vector<24x24xbf16>
    %cst_34 = arith.constant dense<0.000000e+00> : vector<24x32xf32>
    %142 = tpu.matmul %141, %81, %cst_34 {dimension_numbers = #tpu.dot_dimension_numbers<[1], [0], [0], [1], [0, 0, 1, 1], [], []>} : vector<24x24xbf16>, vector<24x32xbf16>, vector<24x32xf32> -> vector<24x32xf32>
    %143 = vector.broadcast %21 : vector<1x32xf32> to vector<24x32xf32>
    %144 = arith.mulf %142, %143 : vector<24x32xf32>
    %145 = arith.addf %124, %144 : vector<24x32xf32>
    %146 = vector.extract_strided_slice %79 {offsets = [0, 24], sizes = [24, 8], strides = [1, 1]} : vector<24x96xf32> to vector<24x8xf32>
    %147 = arith.truncf %146 : vector<24x8xf32> to vector<24x8xbf16>
    %148 = vector.extract_strided_slice %79 {offsets = [0, 56], sizes = [24, 8], strides = [1, 1]} : vector<24x96xf32> to vector<24x8xf32>
    %149 = arith.truncf %148 : vector<24x8xf32> to vector<24x8xbf16>
    %cst_35 = arith.constant dense<0.000000e+00> : vector<24x24xf32>
    %150 = tpu.matmul %147, %149, %cst_35 {dimension_numbers = #tpu.dot_dimension_numbers<[1], [1], [0], [0], [0, 0, 1, 0], [], []>} : vector<24x8xbf16>, vector<24x8xbf16>, vector<24x24xf32> -> vector<24x24xf32>
    %151 = vector.broadcast %34 : vector<1x24xf32> to vector<24x24xf32>
    %152 = arith.addf %150, %151 : vector<24x24xf32>
    %cst_36 = arith.constant dense<0xFF800000> : vector<24xf32>
    %153 = vector.multi_reduction <maximumf>, %152, %cst_36 [1] : vector<24x24xf32> to vector<24xf32>
    %154 = vector.shape_cast %153 : vector<24xf32> to vector<24x1xf32>
    %155 = vector.broadcast %154 : vector<24x1xf32> to vector<24x24xf32>
    %156 = arith.subf %152, %155 : vector<24x24xf32>
    %157 = math.exp %156 : vector<24x24xf32>
    %cst_37 = arith.constant dense<0.000000e+00> : vector<24xf32>
    %158 = vector.multi_reduction <add>, %157, %cst_37 [1] : vector<24x24xf32> to vector<24xf32>
    %159 = vector.shape_cast %158 : vector<24xf32> to vector<24x1xf32>
    %160 = vector.broadcast %159 : vector<24x1xf32> to vector<24x24xf32>
    %161 = arith.divf %157, %160 : vector<24x24xf32>
    %162 = arith.truncf %161 : vector<24x24xf32> to vector<24x24xbf16>
    %cst_38 = arith.constant dense<0.000000e+00> : vector<24x32xf32>
    %163 = tpu.matmul %162, %81, %cst_38 {dimension_numbers = #tpu.dot_dimension_numbers<[1], [0], [0], [1], [0, 0, 1, 1], [], []>} : vector<24x24xbf16>, vector<24x32xbf16>, vector<24x32xf32> -> vector<24x32xf32>
    %164 = vector.broadcast %28 : vector<1x32xf32> to vector<24x32xf32>
    %165 = arith.mulf %163, %164 : vector<24x32xf32>
    %166 = arith.addf %145, %165 : vector<24x32xf32>
    %167 = arith.truncf %166 : vector<24x32xf32> to vector<24x32xbf16>
    %168 = vector.extract_strided_slice %42 {offsets = [0, 96], sizes = [32, 32], strides = [1, 1]} : vector<32x256xbf16> to vector<32x32xbf16>
    %cst_39 = arith.constant dense<0.000000e+00> : vector<24x32xf32>
    %169 = tpu.matmul %167, %168, %cst_39 {dimension_numbers = #tpu.dot_dimension_numbers<[1], [0], [0], [1], [0, 0, 1, 1], [], []>} : vector<24x32xbf16>, vector<32x32xbf16>, vector<24x32xf32> -> vector<24x32xf32>
    %170 = vector.broadcast %48 : vector<1x32xf32> to vector<24x32xf32>
    %171 = arith.addf %169, %170 : vector<24x32xf32>
    %172 = arith.addf %171, %40 : vector<24x32xf32>
    %cst_40 = arith.constant dense<0.000000e+00> : vector<24xf32>
    %173 = vector.multi_reduction <add>, %172, %cst_40 [1] : vector<24x32xf32> to vector<24xf32>
    %174 = vector.shape_cast %173 : vector<24xf32> to vector<24x1xf32>
    %cst_41 = arith.constant 3.200000e+01 : f32
    %175 = vector.broadcast %cst_41 : f32 to vector<24x1xf32>
    %176 = arith.divf %174, %175 : vector<24x1xf32>
    %177 = vector.broadcast %176 : vector<24x1xf32> to vector<24x32xf32>
    %178 = arith.subf %172, %177 : vector<24x32xf32>
    %179 = arith.mulf %178, %178 : vector<24x32xf32>
    %cst_42 = arith.constant dense<0.000000e+00> : vector<24xf32>
    %180 = vector.multi_reduction <add>, %179, %cst_42 [1] : vector<24x32xf32> to vector<24xf32>
    %181 = vector.shape_cast %180 : vector<24xf32> to vector<24x1xf32>
    %cst_43 = arith.constant 3.200000e+01 : f32
    %182 = vector.broadcast %cst_43 : f32 to vector<24x1xf32>
    %183 = arith.divf %181, %182 : vector<24x1xf32>
    %184 = vector.broadcast %176 : vector<24x1xf32> to vector<24x32xf32>
    %185 = arith.subf %172, %184 : vector<24x32xf32>
    %cst_44 = arith.constant 9.99999997E-7 : f32
    %186 = vector.broadcast %cst_44 : f32 to vector<24x1xf32>
    %187 = arith.addf %183, %186 : vector<24x1xf32>
    %188 = math.rsqrt %187 : vector<24x1xf32>
    %189 = vector.broadcast %188 : vector<24x1xf32> to vector<24x32xf32>
    %190 = arith.mulf %185, %189 : vector<24x32xf32>
    %191 = vector.broadcast %49 : vector<1x32xf32> to vector<24x32xf32>
    %192 = arith.mulf %190, %191 : vector<24x32xf32>
    %193 = vector.broadcast %50 : vector<1x32xf32> to vector<24x32xf32>
    %194 = arith.addf %192, %193 : vector<24x32xf32>
    %195 = arith.truncf %194 : vector<24x32xf32> to vector<24x32xbf16>
    %196 = vector.extract_strided_slice %42 {offsets = [0, 128], sizes = [32, 64], strides = [1, 1]} : vector<32x256xbf16> to vector<32x64xbf16>
    %cst_45 = arith.constant dense<0.000000e+00> : vector<24x64xf32>
    %197 = tpu.matmul %195, %196, %cst_45 {dimension_numbers = #tpu.dot_dimension_numbers<[1], [0], [0], [1], [0, 0, 1, 1], [], []>} : vector<24x32xbf16>, vector<32x64xbf16>, vector<24x64xf32> -> vector<24x64xf32>
    %198 = vector.broadcast %51 : vector<1x64xf32> to vector<24x64xf32>
    %199 = arith.addf %197, %198 : vector<24x64xf32>
    %cst_46 = arith.constant 5.000000e-01 : f32
    %200 = vector.broadcast %cst_46 : f32 to vector<24x64xf32>
    %201 = arith.mulf %200, %199 : vector<24x64xf32>
    %cst_47 = arith.constant 0.707106769 : f32
    %202 = vector.broadcast %cst_47 : f32 to vector<24x64xf32>
    %203 = arith.mulf %199, %202 : vector<24x64xf32>
    %204 = math.erf %203 : vector<24x64xf32>
    %cst_48 = arith.constant 1.000000e+00 : f32
    %205 = vector.broadcast %cst_48 : f32 to vector<24x64xf32>
    %206 = arith.addf %205, %204 : vector<24x64xf32>
    %207 = arith.mulf %201, %206 : vector<24x64xf32>
    %208 = arith.truncf %207 : vector<24x64xf32> to vector<24x64xbf16>
    %209 = vector.extract_strided_slice %42 {offsets = [0, 192], sizes = [32, 64], strides = [1, 1]} : vector<32x256xbf16> to vector<32x64xbf16>
    %cst_49 = arith.constant dense<0.000000e+00> : vector<24x32xf32>
    %210 = tpu.matmul %208, %209, %cst_49 {dimension_numbers = #tpu.dot_dimension_numbers<[1], [1], [0], [0], [0, 0, 1, 0], [], []>} : vector<24x64xbf16>, vector<32x64xbf16>, vector<24x32xf32> -> vector<24x32xf32>
    %211 = vector.broadcast %52 : vector<1x32xf32> to vector<24x32xf32>
    %212 = arith.addf %210, %211 : vector<24x32xf32>
    %213 = arith.addf %212, %172 : vector<24x32xf32>
    %c1 = arith.constant 1 : index
    %c0_50 = arith.constant 0 : index
    %c0_51 = arith.constant 0 : index
    %214 = vector.load %arg4[%c1, %c0_50, %c0_51] : memref<2x32x256xbf16, #tpu.memory_space<vmem>>, vector<1x32x256xbf16>
    %215 = vector.shape_cast %214 : vector<1x32x256xbf16> to vector<32x256xbf16>
    %c1_52 = arith.constant 1 : index
    %c0_53 = arith.constant 0 : index
    %c0_54 = arith.constant 0 : index
    %216 = vector.load %arg5[%c1_52, %c0_53, %c0_54] : memref<3x8x128xf32, #tpu.memory_space<vmem>>, vector<1x8x128xf32>
    %217 = vector.shape_cast %216 : vector<1x8x128xf32> to vector<8x128xf32>
    %218 = vector.extract_strided_slice %217 {offsets = [0, 0], sizes = [1, 32], strides = [1, 1]} : vector<8x128xf32> to vector<1x32xf32>
    %219 = vector.extract_strided_slice %217 {offsets = [1, 0], sizes = [1, 32], strides = [1, 1]} : vector<8x128xf32> to vector<1x32xf32>
    %220 = vector.extract_strided_slice %217 {offsets = [2, 0], sizes = [1, 96], strides = [1, 1]} : vector<8x128xf32> to vector<1x96xf32>
    %221 = vector.extract_strided_slice %217 {offsets = [3, 0], sizes = [1, 32], strides = [1, 1]} : vector<8x128xf32> to vector<1x32xf32>
    %222 = vector.extract_strided_slice %217 {offsets = [4, 0], sizes = [1, 32], strides = [1, 1]} : vector<8x128xf32> to vector<1x32xf32>
    %223 = vector.extract_strided_slice %217 {offsets = [5, 0], sizes = [1, 32], strides = [1, 1]} : vector<8x128xf32> to vector<1x32xf32>
    %224 = vector.extract_strided_slice %217 {offsets = [6, 0], sizes = [1, 64], strides = [1, 1]} : vector<8x128xf32> to vector<1x64xf32>
    %225 = vector.extract_strided_slice %217 {offsets = [7, 0], sizes = [1, 32], strides = [1, 1]} : vector<8x128xf32> to vector<1x32xf32>
    %cst_55 = arith.constant dense<0.000000e+00> : vector<24xf32>
    %226 = vector.multi_reduction <add>, %213, %cst_55 [1] : vector<24x32xf32> to vector<24xf32>
    %227 = vector.shape_cast %226 : vector<24xf32> to vector<24x1xf32>
    %cst_56 = arith.constant 3.200000e+01 : f32
    %228 = vector.broadcast %cst_56 : f32 to vector<24x1xf32>
    %229 = arith.divf %227, %228 : vector<24x1xf32>
    %230 = vector.broadcast %229 : vector<24x1xf32> to vector<24x32xf32>
    %231 = arith.subf %213, %230 : vector<24x32xf32>
    %232 = arith.mulf %231, %231 : vector<24x32xf32>
    %cst_57 = arith.constant dense<0.000000e+00> : vector<24xf32>
    %233 = vector.multi_reduction <add>, %232, %cst_57 [1] : vector<24x32xf32> to vector<24xf32>
    %234 = vector.shape_cast %233 : vector<24xf32> to vector<24x1xf32>
    %cst_58 = arith.constant 3.200000e+01 : f32
    %235 = vector.broadcast %cst_58 : f32 to vector<24x1xf32>
    %236 = arith.divf %234, %235 : vector<24x1xf32>
    %237 = vector.broadcast %229 : vector<24x1xf32> to vector<24x32xf32>
    %238 = arith.subf %213, %237 : vector<24x32xf32>
    %cst_59 = arith.constant 9.99999997E-7 : f32
    %239 = vector.broadcast %cst_59 : f32 to vector<24x1xf32>
    %240 = arith.addf %236, %239 : vector<24x1xf32>
    %241 = math.rsqrt %240 : vector<24x1xf32>
    %242 = vector.broadcast %241 : vector<24x1xf32> to vector<24x32xf32>
    %243 = arith.mulf %238, %242 : vector<24x32xf32>
    %244 = vector.broadcast %218 : vector<1x32xf32> to vector<24x32xf32>
    %245 = arith.mulf %243, %244 : vector<24x32xf32>
    %246 = vector.broadcast %219 : vector<1x32xf32> to vector<24x32xf32>
    %247 = arith.addf %245, %246 : vector<24x32xf32>
    %248 = arith.truncf %247 : vector<24x32xf32> to vector<24x32xbf16>
    %249 = vector.extract_strided_slice %215 {offsets = [0, 0], sizes = [32, 96], strides = [1, 1]} : vector<32x256xbf16> to vector<32x96xbf16>
    %cst_60 = arith.constant dense<0.000000e+00> : vector<24x96xf32>
    %250 = tpu.matmul %248, %249, %cst_60 {dimension_numbers = #tpu.dot_dimension_numbers<[1], [0], [0], [1], [0, 0, 1, 1], [], []>} : vector<24x32xbf16>, vector<32x96xbf16>, vector<24x96xf32> -> vector<24x96xf32>
    %251 = vector.broadcast %220 : vector<1x96xf32> to vector<24x96xf32>
    %252 = arith.addf %250, %251 : vector<24x96xf32>
    %253 = vector.extract_strided_slice %252 {offsets = [0, 64], sizes = [24, 32], strides = [1, 1]} : vector<24x96xf32> to vector<24x32xf32>
    %254 = arith.truncf %253 : vector<24x32xf32> to vector<24x32xbf16>
    %cst_61 = arith.constant 0.000000e+00 : f32
    %255 = vector.broadcast %cst_61 : f32 to vector<24x32xf32>
    %256 = vector.extract_strided_slice %252 {offsets = [0, 0], sizes = [24, 8], strides = [1, 1]} : vector<24x96xf32> to vector<24x8xf32>
    %257 = arith.truncf %256 : vector<24x8xf32> to vector<24x8xbf16>
    %258 = vector.extract_strided_slice %252 {offsets = [0, 32], sizes = [24, 8], strides = [1, 1]} : vector<24x96xf32> to vector<24x8xf32>
    %259 = arith.truncf %258 : vector<24x8xf32> to vector<24x8xbf16>
    %cst_62 = arith.constant dense<0.000000e+00> : vector<24x24xf32>
    %260 = tpu.matmul %257, %259, %cst_62 {dimension_numbers = #tpu.dot_dimension_numbers<[1], [1], [0], [0], [0, 0, 1, 0], [], []>} : vector<24x8xbf16>, vector<24x8xbf16>, vector<24x24xf32> -> vector<24x24xf32>
    %261 = vector.broadcast %34 : vector<1x24xf32> to vector<24x24xf32>
    %262 = arith.addf %260, %261 : vector<24x24xf32>
    %cst_63 = arith.constant dense<0xFF800000> : vector<24xf32>
    %263 = vector.multi_reduction <maximumf>, %262, %cst_63 [1] : vector<24x24xf32> to vector<24xf32>
    %264 = vector.shape_cast %263 : vector<24xf32> to vector<24x1xf32>
    %265 = vector.broadcast %264 : vector<24x1xf32> to vector<24x24xf32>
    %266 = arith.subf %262, %265 : vector<24x24xf32>
    %267 = math.exp %266 : vector<24x24xf32>
    %cst_64 = arith.constant dense<0.000000e+00> : vector<24xf32>
    %268 = vector.multi_reduction <add>, %267, %cst_64 [1] : vector<24x24xf32> to vector<24xf32>
    %269 = vector.shape_cast %268 : vector<24xf32> to vector<24x1xf32>
    %270 = vector.broadcast %269 : vector<24x1xf32> to vector<24x24xf32>
    %271 = arith.divf %267, %270 : vector<24x24xf32>
    %272 = arith.truncf %271 : vector<24x24xf32> to vector<24x24xbf16>
    %cst_65 = arith.constant dense<0.000000e+00> : vector<24x32xf32>
    %273 = tpu.matmul %272, %254, %cst_65 {dimension_numbers = #tpu.dot_dimension_numbers<[1], [0], [0], [1], [0, 0, 1, 1], [], []>} : vector<24x24xbf16>, vector<24x32xbf16>, vector<24x32xf32> -> vector<24x32xf32>
    %274 = vector.broadcast %7 : vector<1x32xf32> to vector<24x32xf32>
    %275 = arith.mulf %273, %274 : vector<24x32xf32>
    %276 = arith.addf %255, %275 : vector<24x32xf32>
    %277 = vector.extract_strided_slice %252 {offsets = [0, 8], sizes = [24, 8], strides = [1, 1]} : vector<24x96xf32> to vector<24x8xf32>
    %278 = arith.truncf %277 : vector<24x8xf32> to vector<24x8xbf16>
    %279 = vector.extract_strided_slice %252 {offsets = [0, 40], sizes = [24, 8], strides = [1, 1]} : vector<24x96xf32> to vector<24x8xf32>
    %280 = arith.truncf %279 : vector<24x8xf32> to vector<24x8xbf16>
    %cst_66 = arith.constant dense<0.000000e+00> : vector<24x24xf32>
    %281 = tpu.matmul %278, %280, %cst_66 {dimension_numbers = #tpu.dot_dimension_numbers<[1], [1], [0], [0], [0, 0, 1, 0], [], []>} : vector<24x8xbf16>, vector<24x8xbf16>, vector<24x24xf32> -> vector<24x24xf32>
    %282 = vector.broadcast %34 : vector<1x24xf32> to vector<24x24xf32>
    %283 = arith.addf %281, %282 : vector<24x24xf32>
    %cst_67 = arith.constant dense<0xFF800000> : vector<24xf32>
    %284 = vector.multi_reduction <maximumf>, %283, %cst_67 [1] : vector<24x24xf32> to vector<24xf32>
    %285 = vector.shape_cast %284 : vector<24xf32> to vector<24x1xf32>
    %286 = vector.broadcast %285 : vector<24x1xf32> to vector<24x24xf32>
    %287 = arith.subf %283, %286 : vector<24x24xf32>
    %288 = math.exp %287 : vector<24x24xf32>
    %cst_68 = arith.constant dense<0.000000e+00> : vector<24xf32>
    %289 = vector.multi_reduction <add>, %288, %cst_68 [1] : vector<24x24xf32> to vector<24xf32>
    %290 = vector.shape_cast %289 : vector<24xf32> to vector<24x1xf32>
    %291 = vector.broadcast %290 : vector<24x1xf32> to vector<24x24xf32>
    %292 = arith.divf %288, %291 : vector<24x24xf32>
    %293 = arith.truncf %292 : vector<24x24xf32> to vector<24x24xbf16>
    %cst_69 = arith.constant dense<0.000000e+00> : vector<24x32xf32>
    %294 = tpu.matmul %293, %254, %cst_69 {dimension_numbers = #tpu.dot_dimension_numbers<[1], [0], [0], [1], [0, 0, 1, 1], [], []>} : vector<24x24xbf16>, vector<24x32xbf16>, vector<24x32xf32> -> vector<24x32xf32>
    %295 = vector.broadcast %14 : vector<1x32xf32> to vector<24x32xf32>
    %296 = arith.mulf %294, %295 : vector<24x32xf32>
    %297 = arith.addf %276, %296 : vector<24x32xf32>
    %298 = vector.extract_strided_slice %252 {offsets = [0, 16], sizes = [24, 8], strides = [1, 1]} : vector<24x96xf32> to vector<24x8xf32>
    %299 = arith.truncf %298 : vector<24x8xf32> to vector<24x8xbf16>
    %300 = vector.extract_strided_slice %252 {offsets = [0, 48], sizes = [24, 8], strides = [1, 1]} : vector<24x96xf32> to vector<24x8xf32>
    %301 = arith.truncf %300 : vector<24x8xf32> to vector<24x8xbf16>
    %cst_70 = arith.constant dense<0.000000e+00> : vector<24x24xf32>
    %302 = tpu.matmul %299, %301, %cst_70 {dimension_numbers = #tpu.dot_dimension_numbers<[1], [1], [0], [0], [0, 0, 1, 0], [], []>} : vector<24x8xbf16>, vector<24x8xbf16>, vector<24x24xf32> -> vector<24x24xf32>
    %303 = vector.broadcast %34 : vector<1x24xf32> to vector<24x24xf32>
    %304 = arith.addf %302, %303 : vector<24x24xf32>
    %cst_71 = arith.constant dense<0xFF800000> : vector<24xf32>
    %305 = vector.multi_reduction <maximumf>, %304, %cst_71 [1] : vector<24x24xf32> to vector<24xf32>
    %306 = vector.shape_cast %305 : vector<24xf32> to vector<24x1xf32>
    %307 = vector.broadcast %306 : vector<24x1xf32> to vector<24x24xf32>
    %308 = arith.subf %304, %307 : vector<24x24xf32>
    %309 = math.exp %308 : vector<24x24xf32>
    %cst_72 = arith.constant dense<0.000000e+00> : vector<24xf32>
    %310 = vector.multi_reduction <add>, %309, %cst_72 [1] : vector<24x24xf32> to vector<24xf32>
    %311 = vector.shape_cast %310 : vector<24xf32> to vector<24x1xf32>
    %312 = vector.broadcast %311 : vector<24x1xf32> to vector<24x24xf32>
    %313 = arith.divf %309, %312 : vector<24x24xf32>
    %314 = arith.truncf %313 : vector<24x24xf32> to vector<24x24xbf16>
    %cst_73 = arith.constant dense<0.000000e+00> : vector<24x32xf32>
    %315 = tpu.matmul %314, %254, %cst_73 {dimension_numbers = #tpu.dot_dimension_numbers<[1], [0], [0], [1], [0, 0, 1, 1], [], []>} : vector<24x24xbf16>, vector<24x32xbf16>, vector<24x32xf32> -> vector<24x32xf32>
    %316 = vector.broadcast %21 : vector<1x32xf32> to vector<24x32xf32>
    %317 = arith.mulf %315, %316 : vector<24x32xf32>
    %318 = arith.addf %297, %317 : vector<24x32xf32>
    %319 = vector.extract_strided_slice %252 {offsets = [0, 24], sizes = [24, 8], strides = [1, 1]} : vector<24x96xf32> to vector<24x8xf32>
    %320 = arith.truncf %319 : vector<24x8xf32> to vector<24x8xbf16>
    %321 = vector.extract_strided_slice %252 {offsets = [0, 56], sizes = [24, 8], strides = [1, 1]} : vector<24x96xf32> to vector<24x8xf32>
    %322 = arith.truncf %321 : vector<24x8xf32> to vector<24x8xbf16>
    %cst_74 = arith.constant dense<0.000000e+00> : vector<24x24xf32>
    %323 = tpu.matmul %320, %322, %cst_74 {dimension_numbers = #tpu.dot_dimension_numbers<[1], [1], [0], [0], [0, 0, 1, 0], [], []>} : vector<24x8xbf16>, vector<24x8xbf16>, vector<24x24xf32> -> vector<24x24xf32>
    %324 = vector.broadcast %34 : vector<1x24xf32> to vector<24x24xf32>
    %325 = arith.addf %323, %324 : vector<24x24xf32>
    %cst_75 = arith.constant dense<0xFF800000> : vector<24xf32>
    %326 = vector.multi_reduction <maximumf>, %325, %cst_75 [1] : vector<24x24xf32> to vector<24xf32>
    %327 = vector.shape_cast %326 : vector<24xf32> to vector<24x1xf32>
    %328 = vector.broadcast %327 : vector<24x1xf32> to vector<24x24xf32>
    %329 = arith.subf %325, %328 : vector<24x24xf32>
    %330 = math.exp %329 : vector<24x24xf32>
    %cst_76 = arith.constant dense<0.000000e+00> : vector<24xf32>
    %331 = vector.multi_reduction <add>, %330, %cst_76 [1] : vector<24x24xf32> to vector<24xf32>
    %332 = vector.shape_cast %331 : vector<24xf32> to vector<24x1xf32>
    %333 = vector.broadcast %332 : vector<24x1xf32> to vector<24x24xf32>
    %334 = arith.divf %330, %333 : vector<24x24xf32>
    %335 = arith.truncf %334 : vector<24x24xf32> to vector<24x24xbf16>
    %cst_77 = arith.constant dense<0.000000e+00> : vector<24x32xf32>
    %336 = tpu.matmul %335, %254, %cst_77 {dimension_numbers = #tpu.dot_dimension_numbers<[1], [0], [0], [1], [0, 0, 1, 1], [], []>} : vector<24x24xbf16>, vector<24x32xbf16>, vector<24x32xf32> -> vector<24x32xf32>
    %337 = vector.broadcast %28 : vector<1x32xf32> to vector<24x32xf32>
    %338 = arith.mulf %336, %337 : vector<24x32xf32>
    %339 = arith.addf %318, %338 : vector<24x32xf32>
    %340 = arith.truncf %339 : vector<24x32xf32> to vector<24x32xbf16>
    %341 = vector.extract_strided_slice %215 {offsets = [0, 96], sizes = [32, 32], strides = [1, 1]} : vector<32x256xbf16> to vector<32x32xbf16>
    %cst_78 = arith.constant dense<0.000000e+00> : vector<24x32xf32>
    %342 = tpu.matmul %340, %341, %cst_78 {dimension_numbers = #tpu.dot_dimension_numbers<[1], [0], [0], [1], [0, 0, 1, 1], [], []>} : vector<24x32xbf16>, vector<32x32xbf16>, vector<24x32xf32> -> vector<24x32xf32>
    %343 = vector.broadcast %221 : vector<1x32xf32> to vector<24x32xf32>
    %344 = arith.addf %342, %343 : vector<24x32xf32>
    %345 = arith.addf %344, %213 : vector<24x32xf32>
    %cst_79 = arith.constant dense<0.000000e+00> : vector<24xf32>
    %346 = vector.multi_reduction <add>, %345, %cst_79 [1] : vector<24x32xf32> to vector<24xf32>
    %347 = vector.shape_cast %346 : vector<24xf32> to vector<24x1xf32>
    %cst_80 = arith.constant 3.200000e+01 : f32
    %348 = vector.broadcast %cst_80 : f32 to vector<24x1xf32>
    %349 = arith.divf %347, %348 : vector<24x1xf32>
    %350 = vector.broadcast %349 : vector<24x1xf32> to vector<24x32xf32>
    %351 = arith.subf %345, %350 : vector<24x32xf32>
    %352 = arith.mulf %351, %351 : vector<24x32xf32>
    %cst_81 = arith.constant dense<0.000000e+00> : vector<24xf32>
    %353 = vector.multi_reduction <add>, %352, %cst_81 [1] : vector<24x32xf32> to vector<24xf32>
    %354 = vector.shape_cast %353 : vector<24xf32> to vector<24x1xf32>
    %cst_82 = arith.constant 3.200000e+01 : f32
    %355 = vector.broadcast %cst_82 : f32 to vector<24x1xf32>
    %356 = arith.divf %354, %355 : vector<24x1xf32>
    %357 = vector.broadcast %349 : vector<24x1xf32> to vector<24x32xf32>
    %358 = arith.subf %345, %357 : vector<24x32xf32>
    %cst_83 = arith.constant 9.99999997E-7 : f32
    %359 = vector.broadcast %cst_83 : f32 to vector<24x1xf32>
    %360 = arith.addf %356, %359 : vector<24x1xf32>
    %361 = math.rsqrt %360 : vector<24x1xf32>
    %362 = vector.broadcast %361 : vector<24x1xf32> to vector<24x32xf32>
    %363 = arith.mulf %358, %362 : vector<24x32xf32>
    %364 = vector.broadcast %222 : vector<1x32xf32> to vector<24x32xf32>
    %365 = arith.mulf %363, %364 : vector<24x32xf32>
    %366 = vector.broadcast %223 : vector<1x32xf32> to vector<24x32xf32>
    %367 = arith.addf %365, %366 : vector<24x32xf32>
    %368 = arith.truncf %367 : vector<24x32xf32> to vector<24x32xbf16>
    %369 = vector.extract_strided_slice %215 {offsets = [0, 128], sizes = [32, 64], strides = [1, 1]} : vector<32x256xbf16> to vector<32x64xbf16>
    %cst_84 = arith.constant dense<0.000000e+00> : vector<24x64xf32>
    %370 = tpu.matmul %368, %369, %cst_84 {dimension_numbers = #tpu.dot_dimension_numbers<[1], [0], [0], [1], [0, 0, 1, 1], [], []>} : vector<24x32xbf16>, vector<32x64xbf16>, vector<24x64xf32> -> vector<24x64xf32>
    %371 = vector.broadcast %224 : vector<1x64xf32> to vector<24x64xf32>
    %372 = arith.addf %370, %371 : vector<24x64xf32>
    %cst_85 = arith.constant 5.000000e-01 : f32
    %373 = vector.broadcast %cst_85 : f32 to vector<24x64xf32>
    %374 = arith.mulf %373, %372 : vector<24x64xf32>
    %cst_86 = arith.constant 0.707106769 : f32
    %375 = vector.broadcast %cst_86 : f32 to vector<24x64xf32>
    %376 = arith.mulf %372, %375 : vector<24x64xf32>
    %377 = math.erf %376 : vector<24x64xf32>
    %cst_87 = arith.constant 1.000000e+00 : f32
    %378 = vector.broadcast %cst_87 : f32 to vector<24x64xf32>
    %379 = arith.addf %378, %377 : vector<24x64xf32>
    %380 = arith.mulf %374, %379 : vector<24x64xf32>
    %381 = arith.truncf %380 : vector<24x64xf32> to vector<24x64xbf16>
    %382 = vector.extract_strided_slice %215 {offsets = [0, 192], sizes = [32, 64], strides = [1, 1]} : vector<32x256xbf16> to vector<32x64xbf16>
    %cst_88 = arith.constant dense<0.000000e+00> : vector<24x32xf32>
    %383 = tpu.matmul %381, %382, %cst_88 {dimension_numbers = #tpu.dot_dimension_numbers<[1], [1], [0], [0], [0, 0, 1, 0], [], []>} : vector<24x64xbf16>, vector<32x64xbf16>, vector<24x32xf32> -> vector<24x32xf32>
    %384 = vector.broadcast %225 : vector<1x32xf32> to vector<24x32xf32>
    %385 = arith.addf %383, %384 : vector<24x32xf32>
    %386 = arith.addf %385, %345 : vector<24x32xf32>
    %c2 = arith.constant 2 : index
    %c0_89 = arith.constant 0 : index
    %c0_90 = arith.constant 0 : index
    %387 = vector.load %arg5[%c2, %c0_89, %c0_90] : memref<3x8x128xf32, #tpu.memory_space<vmem>>, vector<1x8x128xf32>
    %388 = vector.shape_cast %387 : vector<1x8x128xf32> to vector<8x128xf32>
    %389 = vector.extract_strided_slice %388 {offsets = [0, 0], sizes = [1, 32], strides = [1, 1]} : vector<8x128xf32> to vector<1x32xf32>
    %390 = vector.extract_strided_slice %388 {offsets = [1, 0], sizes = [1, 32], strides = [1, 1]} : vector<8x128xf32> to vector<1x32xf32>
    %cst_91 = arith.constant dense<0.000000e+00> : vector<24xf32>
    %391 = vector.multi_reduction <add>, %386, %cst_91 [1] : vector<24x32xf32> to vector<24xf32>
    %392 = vector.shape_cast %391 : vector<24xf32> to vector<24x1xf32>
    %cst_92 = arith.constant 3.200000e+01 : f32
    %393 = vector.broadcast %cst_92 : f32 to vector<24x1xf32>
    %394 = arith.divf %392, %393 : vector<24x1xf32>
    %395 = vector.broadcast %394 : vector<24x1xf32> to vector<24x32xf32>
    %396 = arith.subf %386, %395 : vector<24x32xf32>
    %397 = arith.mulf %396, %396 : vector<24x32xf32>
    %cst_93 = arith.constant dense<0.000000e+00> : vector<24xf32>
    %398 = vector.multi_reduction <add>, %397, %cst_93 [1] : vector<24x32xf32> to vector<24xf32>
    %399 = vector.shape_cast %398 : vector<24xf32> to vector<24x1xf32>
    %cst_94 = arith.constant 3.200000e+01 : f32
    %400 = vector.broadcast %cst_94 : f32 to vector<24x1xf32>
    %401 = arith.divf %399, %400 : vector<24x1xf32>
    %402 = vector.broadcast %394 : vector<24x1xf32> to vector<24x32xf32>
    %403 = arith.subf %386, %402 : vector<24x32xf32>
    %cst_95 = arith.constant 9.99999997E-7 : f32
    %404 = vector.broadcast %cst_95 : f32 to vector<24x1xf32>
    %405 = arith.addf %401, %404 : vector<24x1xf32>
    %406 = math.rsqrt %405 : vector<24x1xf32>
    %407 = vector.broadcast %406 : vector<24x1xf32> to vector<24x32xf32>
    %408 = arith.mulf %403, %407 : vector<24x32xf32>
    %409 = vector.broadcast %389 : vector<1x32xf32> to vector<24x32xf32>
    %410 = arith.mulf %408, %409 : vector<24x32xf32>
    %411 = vector.broadcast %390 : vector<1x32xf32> to vector<24x32xf32>
    %412 = arith.addf %410, %411 : vector<24x32xf32>
    %c0_96 = arith.constant 0 : index
    %c0_97 = arith.constant 0 : index
    %413 = vector.load %arg6[%c0_96, %c0_97] : memref<24x32xf32, #tpu.memory_space<vmem>>, vector<24x32xf32>
    tpu.vector_store %arg6[%c0_96, %c0_97], %412 {strides = array<i32>} : memref<24x32xf32, #tpu.memory_space<vmem>>, vector<24x32xf32>,
    return
  }
  func.func @transform_0(%arg0: i32) -> (i32, i32) {
    %c0_i32 = arith.constant 0 : i32
    %c0_i32_0 = arith.constant 0 : i32
    return %arg0, %c0_i32 : i32, i32
  }
  func.func @transform_1(%arg0: i32) -> (i32, i32) {
    %c0_i32 = arith.constant 0 : i32
    %c0_i32_0 = arith.constant 0 : i32
    %c0_i32_1 = arith.constant 0 : i32
    return %c0_i32, %c0_i32_0 : i32, i32
  }
  func.func @transform_2(%arg0: i32) -> (i32, i32) {
    %c0_i32 = arith.constant 0 : i32
    %c0_i32_0 = arith.constant 0 : i32
    %c0_i32_1 = arith.constant 0 : i32
    return %c0_i32, %c0_i32_0 : i32, i32
  }
  func.func @transform_3(%arg0: i32) -> (i32, i32, i32) {
    %c0_i32 = arith.constant 0 : i32
    %c0_i32_0 = arith.constant 0 : i32
    %c0_i32_1 = arith.constant 0 : i32
    %c0_i32_2 = arith.constant 0 : i32
    return %c0_i32, %c0_i32_0, %c0_i32_1 : i32, i32, i32
  }
  func.func @transform_4(%arg0: i32) -> (i32, i32, i32) {
    %c0_i32 = arith.constant 0 : i32
    %c0_i32_0 = arith.constant 0 : i32
    %c0_i32_1 = arith.constant 0 : i32
    %c0_i32_2 = arith.constant 0 : i32
    return %c0_i32, %c0_i32_0, %c0_i32_1 : i32, i32, i32
  }
  func.func @transform_5(%arg0: i32) -> (i32, i32) {
    %c0_i32 = arith.constant 0 : i32
    %c0_i32_0 = arith.constant 0 : i32
    return %arg0, %c0_i32 : i32, i32
  }
}

</mosaic_0001>

<bundles_post_ra>
// kernel: transformer_forward.1
= control target key start
LH: loop header
LB: loop body
LE: loop exit
PB: predicated region body
PF: predicated region fallthrough
CT: control target
= control target key end

     0   :  { %s3230_s18 = smov 0   ;;  %s3858_s0 = inlined_call_operand.vmem [shape: f32[48,48], index: 0, kind: input, shape index: {}]   ;;  %s3859_s1 = inlined_call_operand.vmem [shape: bf16[48,32], index: 1, kind: input, shape index: {}]   ;;  %s3860_s2 = inlined_call_operand.vmem [shape: f32[24,32], index: 2, kind: input, shape index: {}]   ;;  %s3861_s3 = inlined_call_operand.vmem [shape: bf16[2,32,256], index: 3, kind: input, shape index: {}]   ;;  %s3862_s4 = inlined_call_operand.vmem [shape: f32[3,8,128], index: 4, kind: input, shape index: {}]   ;;  %s3863_s5 = inlined_call_operand.vmem [shape: f32[48,32], index: 5, kind: output, shape index: {}]  }
   0x1 LB: > { %s2598_s19 = sadd.s32 4294967295, %s3187_s18   ;;  %p2602_p0 = scmp.ge.s32.totalorder %s3187_s18, 1  ;;  %s3187_s18 = sphi %s3230_s18, %s15_s18  }
   0x2   : > { %p188_p1 = scmp.lt.s32.totalorder %s3187_s18, 3 }
   0x4   : > { %p189_p2 = pnand %p2602_p0, %p188_p1 }
   0x5   : > { %v3028_v0 = vld [vmem:[%s3859_s1] sm:$0xff] (!%p189_p2)   ;;  %s216_s22 = smul.u32 (!%p189_p2), 3, %s2598_s19  ;;  %v3029_v1 = vld [vmem:[%s3859_s1 + $0x8] sm:$0xff] (!%p189_p2)   ;;  %v3030_v2 = vld [vmem:[%s3859_s1 + $0x10] sm:$0xff] (!%p189_p2)   ;;  %vm285_vm0 = vcmask (!%p189_p2), 392192   ;;  %vm345_vm1 = vcmask (!%p189_p2), 261120   ;;  %v229_v45 = vlaneseq (!%p189_p2) }
   0x6   : > { %192 = sbr.rel (%p189_p2) target bundleno = 8191 (0x1fff), region = 40  ;;  %2779 = vmatprep.subr.bf16.mxu0 (!%p189_p2), %v3028_v0  ;;  %v266_v8 = vld [vmem:[%s3860_s2 + $0x10] sm:$0xff] (!%p189_p2)  ;;  %v264_v9 = vld [vmem:[%s3860_s2] sm:$0xff] (!%p189_p2)  ;;  %v265_v13 = vld [vmem:[%s3860_s2 + $0x8] sm:$0xff] (!%p189_p2)  ;;  %s3189_s19 = smov (!%p189_p2), 96   ;;  %vm480_vm2 = vcmask (!%p189_p2), 64512  }
   0x7   : > { %p217_p3 = scmp.lt.s32.totalorder (!%p189_p2), %s216_s22, 5  ;;  %2780 = vmatpush3.bf16.msra.mxu0 (!%p189_p2), %v3028_v0  ;;  %v3285_v36 = vld [vmem:[%s3861_s3] ss:$8 sps:$4 sm:$0xff] (!%p189_p2)   ;;  %v3290_v37 = vld [vmem:[%s3861_s3 + $0x10] ss:$8 sps:$4 sm:$0xff] (!%p189_p2)   ;;  %v3297_v48 = vshrl.u32 (!%p189_p2), %v229_v45, 7 }
   0x8   : > { %2781 = vmatprep.subr.bf16.mxu0 (!%p189_p2), %v3029_v1  ;;  %2789 = vmatprep.subr.bf16.mxu1 (!%p189_p2), %v3285_v36  ;;  %v3305_v50 = vld [vmem:[%s3862_s4] sm:$0xff] (!%p189_p2)  ;;  %s3190_s20 = smov (!%p189_p2), 88   ;;  %s3191_s21 = smov (!%p189_p2), 120   ;;  %vm541_vm4 = vcmask (!%p189_p2), 195584   ;;  %vm588_vm5 = vcmask (!%p189_p2), 1043456  }
   0x9   : > { %2790 = vmatpush3.bf16.msra.mxu1 (!%p189_p2), %v3285_v36  ;;  %v3300_v49 = vsub.s32 (!%p189_p2), 0, %v3297_v48  ;;  %v3310_v54 = vsub.s32 (!%p189_p2), 1, %v3297_v48  ;;  %s3193_s23 = smov (!%p189_p2), 64   ;;  %s3194_s24 = smov (!%p189_p2), 80  }
   0xa   : > { %2791 = vmatprep.subr.bf16.mxu1 (!%p189_p2), %v3290_v37  ;;  %s3195_s25 = smov (!%p189_p2), 112   ;;  %s3197_s26 = smov (!%p189_p2), 72  }
   0xb   : > { %2782 = vmatpush3.bf16.msra.mxu0 (!%p189_p2), %v3029_v1  ;;  %v389_v53 = vrot.slane (!%p189_p2), %v3305_v50, %v3300_v49  ;;  %v396_v60 = vrot.slane (!%p189_p2), %v3305_v50, %v3310_v54  ;;  %s3198_s28 = smov (!%p189_p2), 104   ;;  %s3199_s29 = smov (!%p189_p2), 32  }
   0xc   : > { %2783 = vmatprep.subr.bf16.mxu0 (!%p189_p2), %v3030_v2 }
   0xd   : > { %s3865_s22 = smov (!%p217_p3, %s216_s22), 5  ;;  %2792 = vmatpush3.bf16.msra.mxu1 %v3290_v37 }
   0xe   : > { %s2603_s27 = sshll.u32 %s3865_s22, 3 }
   0xf   : > { %s220_s30 = scalar_lea.vmem %s3858_s0, %s2603_s27  ;;  %2784 = vmatpush3.bf16.msra.mxu0 %v3030_v2 }
  0x10   : > { %v253_v3 = vld [vmem:[%s220_s30] sm:$0xff]  ;;  %v254_v4 = vld [vmem:[%s220_s30 + $0x8] sm:$0xff]  ;;  %v255_v5 = vld [vmem:[%s220_s30 + $0x10] sm:$0xff] }
  0x11   : > { %v256_v6 = vpack.c.bf16 %v254_v4, %v253_v3  ;;  %v257_v7 = vpack.c.bf16 %v255_v5, %v255_v5  ;;  %v404_v4 = vsub.s32 2, %v3297_v48 }
  0x13   : > { %2785 = vmatprep.mubr.msk.bf16.mxu0 %vm285_vm0, %v256_v6  ;;  %v405_v5 = vrot.slane %v3305_v50, %v404_v4 }
  0x14   : > { %2786 = vmatmul.mubr.msk.bf16.vlgmr.msra.gmra.mrb[0].mxu0 %vm285_vm0, %v257_v7  ;;  %vm1350_vm0 = vcmask 523264  }
  0xe7   : > { %v2787_v10 = vpop.f32.mrb[0].mxu0 }
  0xe8   : > { %v3261_v11 = vadd.f32 %v2787_v10, %v266_v8  ;;  %v326_v12 = vpop.f32.mrb[1].mxu0 }
  0xe9   : > { %v3266_v14 = vadd.f32 %v326_v12, %v264_v9  ;;  %v2788_v15 = vpop.f32.mrb[2].mxu0 }
  0xea   : > { %v329_v16 = vpop.f32.mrb[3].mxu0  ;;  %v352_v17 = vsel %vm345_vm1, %v3261_v11, 0.0 }
  0xeb   : > { %v3270_v18 = vadd.f32 %v329_v16, %v265_v13  ;;  %353 = vadd.xlane.f32.xlu1 %v352_v17  ;;  %v346_v19 = vsel %vm345_vm1, %v3266_v14, 0.0 }
  0xec   : > { %347 = vadd.xlane.f32.xlu0 %v346_v19 }
  0xed   : > { %v349_v20 = vsel %vm345_vm1, %v3270_v18, 0.0 }
  0xf0   : > { %350 = vadd.xlane.f32.xlu0 %v349_v20 }
 0x178   : > { %v354_v21 = vpop.xlane.xlu1 %353 }
 0x179   : > { %v358_v22 = vmul.f32 0.03125, %v354_v21  ;;  %v348_v23 = vpop.xlane.xlu0 %347 }
 0x17a   : > { %v356_v24 = vmul.f32 0.03125, %v348_v23 }
 0x17b   : > { %v361_v25 = vsub.f32 %v3261_v11, %v358_v22 }
 0x17c   : > { %v359_v26 = vsub.f32 %v3266_v14, %v356_v24 }
 0x17d   : > { %v351_v27 = vpop.xlane.xlu0 %350  ;;  %v364_v32 = vmul.f32 %v361_v25, %v361_v25 }
 0x17e   : > { %v357_v28 = vmul.f32 0.03125, %v351_v27  ;;  %v362_v29 = vmul.f32 %v359_v26, %v359_v26 }
 0x17f   : > { %v371_v34 = vsel %vm345_vm1, %v364_v32, 0.0 }
 0x180   : > { %v360_v30 = vsub.f32 %v3270_v18, %v357_v28  ;;  %v365_v31 = vsel %vm345_vm1, %v362_v29, 0.0  ;;  %v3351_v28 = vand.u32 127, %v229_v45  ;;  %v3192_v29 = vmov -1e+30  }
 0x181   : > { %366 = vadd.xlane.f32.xlu1 %v365_v31 }
 0x182   : > { %v363_v33 = vmul.f32 %v360_v30, %v360_v30  ;;  %vm251_vm3 = vcmp.lt.s32.totalorder %v3351_v28, 17  ;;  %vm236_vm6 = vcmp.ge.s32.totalorder %v3351_v28, 8  ;;  %vm237_vm7 = vcmp.lt.s32.totalorder %v3351_v28, 16 }
 0x183   : > { %vm232_vm8 = vcmp.lt.s32.totalorder %v3351_v28, 8  ;;  %vm238_vm9 = vmand %vm236_vm6, %vm237_vm7  ;;  %vm241_vm10 = vcmp.ge.s32.totalorder %v3351_v28, 16  ;;  %vm242_vm11 = vcmp.lt.s32.totalorder %v3351_v28, 24  ;;  %vm246_vm13 = vcmp.ge.s32.totalorder %v3351_v28, 24 }
 0x184   : > { %v368_v35 = vsel %vm345_vm1, %v363_v33, 0.0  ;;  %vm243_vm12 = vmand %vm241_vm10, %vm242_vm11  ;;  %vm247_vm14 = vcmp.lt.s32.totalorder %v3351_v28, 32 }
 0x185   : > { %372 = vadd.xlane.f32.xlu1 %v371_v34  ;;  %369 = vadd.xlane.f32.xlu0 %v368_v35  ;;  %vm248_vm15 = vmand %vm246_vm13, %vm247_vm14 }
 0x20e   : > { %v367_v38 = vpop.xlane.xlu1 %366 }
 0x20f   : > { %v374_v39 = vmul.f32 0.03125, %v367_v38 }
 0x211   : > { %v377_v40 = vadd.f32 1e-06, %v374_v39 }
 0x212   : > { %v373_v41 = vpop.xlane.xlu1 %372  ;;  %v370_v42 = vpop.xlane.xlu0 %369 }
 0x213   : > { %3043 = vrsqrt.f32 %v377_v40  ;;  %v376_v43 = vmul.f32 0.03125, %v373_v41  ;;  %v375_v44 = vmul.f32 0.03125, %v370_v42 }
 0x215   : > { %v379_v46 = vadd.f32 1e-06, %v376_v43  ;;  %v378_v47 = vadd.f32 1e-06, %v375_v44 }
 0x217   : > { %3045 = vrsqrt.f32 %v379_v46 }
 0x218   : > { %3047 = vrsqrt.f32 %v378_v47 }
 0x21d   : > { %v3044_v51 = vpop.eup %3043 }
 0x21e   : > { %v383_v52 = vmul.f32 %v3044_v51, %v359_v26 }
 0x220   : > { %v390_v59 = vmul.f32 %v389_v53, %v383_v52 }
 0x221   : > { %v3046_v55 = vpop.eup %3045 }
 0x222   : > { %v3048_v56 = vpop.eup %3047  ;;  %v385_v57 = vmul.f32 %v3046_v55, %v361_v25  ;;  %v397_v0 = vadd.f32 %v396_v60, %v390_v59 }
 0x223   : > { %v384_v58 = vmul.f32 %v3048_v56, %v360_v30  ;;  %v3354_v30 = vsel %vm251_vm3, 0.0, %v3192_v29 }
 0x224   : > { %v392_v61 = vmul.f32 %v389_v53, %v385_v57 }
 0x225   : > { %v391_v62 = vmul.f32 %v389_v53, %v384_v58 }
 0x226   : > { %v399_v63 = vadd.f32 %v396_v60, %v392_v61 }
 0x227   : > { %v398_v1 = vadd.f32 %v396_v60, %v391_v62 }
 0x228   : > { %v401_v2 = vpack.c.bf16 %v399_v63, %v399_v63 }
 0x229   : > { %v400_v3 = vpack.c.bf16 %v398_v1, %v397_v0 }
 0x22b   : > { %2793 = vmatprep.mubr.msk.bf16.mxu1 %vm345_vm1, %v400_v3 }
 0x22c   : > { %2794 = vmatmul.mubr.msk.bf16.vlgmr.msra.gmra.mrb[0].mxu1 %vm345_vm1, %v401_v2 }
 0x2ff   : > { %v2795_v6 = vpop.f32.mrb[0].mxu1 }
 0x300   : > { %v467_v7 = vadd.f32 %v2795_v6, %v405_v5  ;;  %v458_v8 = vpop.f32.mrb[1].mxu1 }
 0x301   : > { %v2796_v9 = vpop.f32.mrb[2].mxu1  ;;  %v459_v13 = vadd.f32 %v458_v8, %v405_v5 }
 0x302   : > { %v3320_v10 = vpack.c.bf16 %v467_v7, %v467_v7  ;;  %v461_v12 = vpop.f32.mrb[3].mxu1 }
 0x303   : > { %v462_v15 = vadd.f32 %v461_v12, %v405_v5 }
 0x304   : > { %478 = vrot.lane.b32.xlu1 %v3320_v10, %s3189_s19 }
 0x305   : > { %v3324_v16 = vpack.c.bf16 %v462_v15, %v459_v13 }
 0x307   : > { %476 = vrot.lane.b32.xlu0 %v3324_v16, %s3189_s19  ;;  %2801 = vmatprep.mubr.msk.bf16.mxu1 %vm480_vm2, %v3324_v16 }
 0x308   : > { %650 = vrot.lane.b32.xlu1 %v3324_v16, %s3190_s20 }
 0x30b   : > { %646 = vrot.lane.b32.xlu0 %v3324_v16, %s3191_s21 }
 0x30c   : > { %652 = vrot.lane.b32.xlu1 %v3320_v10, %s3190_s20 }
 0x310   : > { %648 = vrot.lane.b32.xlu1 %v3320_v10, %s3191_s21 }
 0x376   : > { %v479_v17 = vpop.permute.xlu1 %478 }
 0x377   : > { %v491_v25 = vsel %vm480_vm2, %v479_v17, 0 }
 0x379   : > { %v477_v19 = vpop.permute.xlu0 %476 }
 0x37a   : > { %v651_v20 = vpop.permute.xlu1 %650  ;;  %2981 = vmatprep.subr.msk.bf16.mxu1 %vm480_vm2, %v477_v19  ;;  %v488_v21 = vsel %vm480_vm2, %v477_v19, 0 }
 0x37b   : > { %2798 = vmatpush3.bf16.xpose.msra.mxu1 %v488_v21  ;;  %2984 = vmatprep.subr.msk.bf16.mxu0 %vm480_vm2, %v651_v20  ;;  %v661_v22 = vsel %vm480_vm2, %v651_v20, 0 }
 0x37c   : > { %2982 = vmatprep.subr.msk.bf16.mxu1 %vm480_vm2, %v479_v17  ;;  %2814 = vmatpush3.bf16.xpose.msra.mxu0 %v661_v22 }
 0x37d   : > { %v647_v23 = vpop.permute.xlu0 %646 }
 0x37e   : > { %v653_v24 = vpop.permute.xlu1 %652  ;;  %2817 = vmatprep.mubr.msk.bf16.mxu0 %vm480_vm2, %v647_v23 }
 0x37f   : > { %2985 = vmatprep.subr.msk.bf16.mxu0 %vm480_vm2, %v653_v24  ;;  %v664_v26 = vsel %vm480_vm2, %v653_v24, 0 }
 0x382   : > { %v649_v27 = vpop.permute.xlu1 %648 }
 0x383   : > { %2800 = vmatpush3.bf16.xpose.msra.mxu1 %v491_v25 }
 0x384   : > { %2816 = vmatpush3.bf16.xpose.msra.mxu0 %v664_v26 }
 0x38a   : > { %2802 = vmatmul.mubr.msk.bf16.vlgmr.msra.gmra.mrb[4].mxu1 %vm480_vm2, %v3320_v10 }
 0x38b   : > { %2818 = vmatmul.mubr.msk.bf16.vlgmr.msra.gmra.mrb[4].mxu0 %vm480_vm2, %v649_v27 }
 0x45d   : > { %v2803_v31 = vpop.f32.mrb[4].mxu1 }
 0x45e   : > { %v527_v32 = vpop.f32.mrb[5].mxu1  ;;  %v2819_v33 = vpop.f32.mrb[4].mxu0  ;;  %v536_v41 = vadd.f32 %v2803_v31, %v3354_v30 }
 0x45f   : > { %v528_v34 = vadd.f32 %v527_v32, %v3354_v30  ;;  %v2804_v35 = vpop.f32.mrb[6].mxu1  ;;  %v700_v38 = vpop.f32.mrb[5].mxu0  ;;  %v709_v45 = vadd.f32 %v2819_v33, %v3354_v30 }
 0x460   : > { %v530_v39 = vpop.f32.mrb[7].mxu1  ;;  %v2820_v40 = vpop.f32.mrb[6].mxu0  ;;  %v701_v47 = vadd.f32 %v700_v38, %v3354_v30  ;;  %v548_v51 = vsel %vm541_vm4, %v536_v41, -inf }
 0x461   : > { %v531_v42 = vadd.f32 %v530_v39, %v3354_v30  ;;  %v703_v43 = vpop.f32.mrb[7].mxu0  ;;  %v542_v44 = vsel %vm541_vm4, %v528_v34, -inf  ;;  %v720_v52 = vsel %vm541_vm4, %v709_v45, -inf }
 0x462   : > { %543 = vmax.xlane.f32.xlu0 %v542_v44  ;;  %v704_v53 = vadd.f32 %v703_v43, %v3354_v30  ;;  %v714_v55 = vsel %vm541_vm4, %v701_v47, -inf }
 0x463   : > { %v545_v46 = vsel %vm541_vm4, %v531_v42, -inf }
 0x464   : > { %546 = vmax.xlane.f32.xlu1 %v545_v46  ;;  %v717_v56 = vsel %vm541_vm4, %v704_v53, -inf }
 0x466   : > { %549 = vmax.xlane.f32.xlu0 %v548_v51 }
 0x468   : > { %721 = vmax.xlane.f32.xlu1 %v720_v52 }
 0x46a   : > { %715 = vmax.xlane.f32.xlu0 %v714_v55 }
 0x46e   : > { %718 = vmax.xlane.f32.xlu0 %v717_v56 }
 0x4ef   : > { %v544_v57 = vpop.xlane.xlu0 %543 }
 0x4f0   : > { %v551_v58 = vsub.f32 %v528_v34, %v544_v57 }
 0x4f1   : > { %v547_v59 = vpop.xlane.xlu1 %546 }
 0x4f2   : > { %v554_v62 = vmul.f32 1.442695, %v551_v58  ;;  %v552_v2 = vsub.f32 %v531_v42, %v547_v59 }
 0x4f3   : > { %v550_v60 = vpop.xlane.xlu0 %549 }
 0x4f4   : > { %v553_v61 = vsub.f32 %v536_v41, %v550_v60  ;;  %v556_v8 = vmul.f32 1.442695, %v552_v2 }
 0x4f5   : > { %v722_v63 = vpop.xlane.xlu1 %721 }
 0x4f6   : > { %v558_v0 = vmul.f32 1.442695, %v553_v61  ;;  %v725_v1 = vsub.f32 %v709_v45, %v722_v63 }
 0x4f7   : > { %v716_v3 = vpop.xlane.xlu0 %715 }
 0x4f8   : > { %3049 = vpow2.f32 %v558_v0  ;;  %v730_v5 = vmul.f32 1.442695, %v725_v1  ;;  %v723_v6 = vsub.f32 %v701_v47, %v716_v3 }
 0x4f9   : > { %3051 = vpow2.f32 %v554_v62 }
 0x4fa   : > { %3053 = vpow2.f32 %v730_v5  ;;  %v726_v7 = vmul.f32 1.442695, %v723_v6 }
 0x4fb   : > { %v719_v9 = vpop.xlane.xlu0 %718 }
 0x4fc   : > { %3055 = vpow2.f32 %v726_v7  ;;  %v724_v12 = vsub.f32 %v704_v53, %v719_v9  ;;  %v3196_v9 = vmov 0.0  }
 0x4fd   : > { %3057 = vpow2.f32 %v556_v8 }
 0x4fe   : > { %v728_v13 = vmul.f32 1.442695, %v724_v12  ;;  %v3409_v12 = vsel %vm232_vm8, 1.0, %v3196_v9 }
 0x500   : > { %3059 = vpow2.f32 %v728_v13  ;;  %v3412_v13 = vsel %vm238_vm9, 1.0, %v3196_v9 }
 0x502   : > { %v3050_v15 = vpop.eup %3049 }
 0x503   : > { %v3052_v17 = vpop.eup %3051  ;;  %v566_v19 = vsel %vm541_vm4, %v3050_v15, 0.0 }
 0x504   : > { %v3369_v20 = vpop.eup %3053  ;;  %567 = vadd.xlane.f32.xlu0 %v566_v19  ;;  %v560_v23 = vsel %vm541_vm4, %v3052_v17, 0.0 }
 0x505   : > { %v738_v21 = vsel %vm541_vm4, %v3369_v20, 0.0 }
 0x506   : > { %v3056_v22 = vpop.eup %3055  ;;  %739 = vadd.xlane.f32.xlu1 %v738_v21 }
 0x507   : > { %v3058_v24 = vpop.eup %3057  ;;  %v732_v25 = vsel %vm541_vm4, %v3056_v22, 0.0 }
 0x508   : > { %561 = vadd.xlane.f32.xlu0 %v560_v23  ;;  %v563_v29 = vsel %vm541_vm4, %v3058_v24, 0.0 }
 0x50a   : > { %v3060_v26 = vpop.eup %3059  ;;  %733 = vadd.xlane.f32.xlu1 %v732_v25 }
 0x50b   : > { %v735_v27 = vsel %vm541_vm4, %v3060_v26, 0.0 }
 0x50c   : > { %736 = vadd.xlane.f32.xlu0 %v735_v27 }
 0x50e   : > { %564 = vadd.xlane.f32.xlu1 %v563_v29 }
 0x51f   : > { %579 = vrot.lane.b32.xlu1 %v3320_v10, %s3193_s23 }
 0x522   : > { %577 = vrot.lane.b32.xlu0 %v3324_v16, %s3193_s23 }
 0x523   : > { %813 = vrot.lane.b32.xlu1 %v3324_v16, %s3194_s24 }
 0x526   : > { %809 = vrot.lane.b32.xlu0 %v3324_v16, %s3195_s25 }
 0x527   : > { %815 = vrot.lane.b32.xlu1 %v3320_v10, %s3194_s24 }
 0x52b   : > { %811 = vrot.lane.b32.xlu1 %v3320_v10, %s3195_s25 }
 0x591   : > { %v568_v31 = vpop.xlane.xlu0 %567 }
 0x592   : > { %3061 = vrcp.f32 %v568_v31 }
 0x593   : > { %v740_v32 = vpop.xlane.xlu1 %739 }
 0x595   : > { %v562_v33 = vpop.xlane.xlu0 %561 }
 0x596   : > { %3063 = vrcp.f32 %v562_v33 }
 0x597   : > { %v734_v34 = vpop.xlane.xlu1 %733 }
 0x599   : > { %v737_v35 = vpop.xlane.xlu0 %736 }
 0x59a   : > { %3065 = vrcp.f32 %v737_v35 }
 0x59b   : > { %3067 = vrcp.f32 %v734_v34  ;;  %v565_v38 = vpop.xlane.xlu1 %564 }
 0x59c   : > { %3069 = vrcp.f32 %v565_v38  ;;  %v3062_v41 = vpop.eup %3061 }
 0x59d   : > { %v578_v39 = vpop.permute.xlu0 %577  ;;  %3071 = vrcp.f32 %v740_v32  ;;  %v574_v47 = vmul.f32 %v3062_v41, %v3050_v15 }
 0x59e   : > { %2805 = vmatprep.subr.bf16.mxu1 %v578_v39  ;;  %2837 = vmatprep.subr.bf16.mxu0 %v578_v39 }
 0x59f   : > { %v580_v40 = vpop.permute.xlu1 %579  ;;  %2806 = vmatpush3.bf16.msra.mxu1 %v578_v39  ;;  %2838 = vmatpush3.bf16.msra.mxu0 %v578_v39  ;;  %v576_v57 = vpack.c.bf16 %v574_v47, %v574_v47 }
 0x5a0   : > { %2983 = vmatprep.subr.msk.bf16.mxu1 %vm588_vm5, %v580_v40  ;;  %2989 = vmatprep.subr.msk.bf16.mxu0 %vm588_vm5, %v580_v40  ;;  %v590_v42 = vsel %vm588_vm5, %v580_v40, 0  ;;  %v3064_v43 = vpop.eup %3063 }
 0x5a1   : > { %v570_v51 = vmul.f32 %v3064_v43, %v3052_v17  ;;  %v810_v63 = vpop.permute.xlu0 %809 }
 0x5a3   : > { %2808 = vmatpush3.bf16.msra.mxu1 %v590_v42  ;;  %2840 = vmatpush3.bf16.msra.mxu0 %v590_v42  ;;  %v814_v61 = vpop.permute.xlu1 %813 }
 0x5a4   : > { %v3066_v44 = vpop.eup %3065  ;;  %2821 = vmatprep.subr.bf16.mxu1 %v578_v39  ;;  %v824_v0 = vsel %vm480_vm2, %v814_v61, 0 }
 0x5a5   : > { %v3068_v45 = vpop.eup %3067  ;;  %v744_v53 = vmul.f32 %v3066_v44, %v3060_v26 }
 0x5a6   : > { %v3070_v46 = vpop.eup %3069  ;;  %v742_v56 = vmul.f32 %v3068_v45, %v3056_v22 }
 0x5a7   : > { %v572_v52 = vmul.f32 %v3070_v46, %v3058_v24  ;;  %v3072_v58 = vpop.eup %3071  ;;  %v816_v1 = vpop.permute.xlu1 %815 }
 0x5a8   : > { %v747_v59 = vpack.c.bf16 %v744_v53, %v742_v56  ;;  %v746_v60 = vmul.f32 %v3072_v58, %v3369_v20  ;;  %v827_v2 = vsel %vm480_vm2, %v816_v1, 0 }
 0x5a9   : > { %v575_v55 = vpack.c.bf16 %v572_v52, %v570_v51 }
 0x5aa   : > { %v748_v62 = vpack.c.bf16 %v746_v60, %v746_v60 }
 0x5ab   : > { %2809 = vmatprep.mubr.msk.bf16.mxu1 %vm541_vm4, %v575_v55  ;;  %v812_v3 = vpop.permute.xlu1 %811 }
 0x5ac   : > { %2810 = vmatmul.mubr.msk.bf16.vlgmr.msra.gmra.mrb[8].mxu1 %vm541_vm4, %v576_v57 }
 0x5ad   : > { %2822 = vmatpush3.bf16.msra.mxu1 %v578_v39  ;;  %2825 = vmatprep.mubr.msk.bf16.mxu1 %vm541_vm4, %v747_v59 }
 0x5ae   : > { %2986 = vmatprep.subr.msk.bf16.mxu1 %vm588_vm5, %v580_v40 }
 0x5b1   : > { %2824 = vmatpush3.bf16.msra.mxu1 %v590_v42 }
 0x5b2   : > { %2987 = vmatprep.subr.msk.bf16.mxu1 %vm480_vm2, %v814_v61 }
 0x5b4   : > { %2826 = vmatmul.mubr.msk.bf16.vlgmr.msra.gmra.mrb[12].mxu1 %vm541_vm4, %v748_v62 }
 0x5b5   : > { %2833 = vmatprep.mubr.msk.bf16.mxu1 %vm480_vm2, %v810_v63 }
 0x5ba   : > { %2830 = vmatpush3.bf16.xpose.msra.mxu1 %v824_v0 }
 0x5bb   : > { %2988 = vmatprep.subr.msk.bf16.mxu1 %vm480_vm2, %v816_v1 }
 0x5c2   : > { %2832 = vmatpush3.bf16.xpose.msra.mxu1 %v827_v2 }
 0x5c3   : > { %2853 = vmatprep.subr.bf16.mxu1 %v578_v39 }
 0x5c9   : > { %2834 = vmatmul.mubr.msk.bf16.vlgmr.msra.gmra.mrb[16].mxu1 %vm480_vm2, %v812_v3 }
 0x5ca   : > { %2854 = vmatpush3.bf16.msra.mxu1 %v578_v39 }
 0x5cb   : > { %2992 = vmatprep.subr.msk.bf16.mxu1 %vm588_vm5, %v580_v40 }
 0x5ce   : > { %2856 = vmatpush3.bf16.msra.mxu1 %v590_v42 }
 0x67f   : > { %v2811_v5 = vpop.f32.mrb[8].mxu1 }
 0x680   : > { %v626_v6 = vpop.f32.mrb[9].mxu1  ;;  %v642_v17 = vmul.f32 %v2811_v5, %v3409_v12 }
 0x681   : > { %v2812_v7 = vpop.f32.mrb[10].mxu1  ;;  %v640_v21 = vmul.f32 %v3409_v12, %v626_v6 }
 0x682   : > { %v629_v8 = vpop.f32.mrb[11].mxu1 }
 0x683   : > { %v641_v26 = vmul.f32 %v3409_v12, %v629_v8 }
 0x687   : > { %v2827_v15 = vpop.f32.mrb[12].mxu1 }
 0x688   : > { %v805_v19 = vmul.f32 %v2827_v15, %v3412_v13  ;;  %v789_v20 = vpop.f32.mrb[13].mxu1 }
 0x689   : > { %v803_v22 = vmul.f32 %v3412_v13, %v789_v20  ;;  %v2828_v23 = vpop.f32.mrb[14].mxu1 }
 0x68a   : > { %v3418_v24 = vadd.f32 %v805_v19, %v642_v17  ;;  %v792_v25 = vpop.f32.mrb[15].mxu1  ;;  %v3454_v23 = vsel %vm243_vm12, 1.0, %v3196_v9 }
 0x68b   : > { %v3421_v27 = vadd.f32 %v803_v22, %v640_v21  ;;  %v804_v29 = vmul.f32 %v3412_v13, %v792_v25 }
 0x68d   : > { %v3424_v31 = vadd.f32 %v804_v29, %v641_v26 }
 0x69c   : > { %v2835_v32 = vpop.f32.mrb[16].mxu1 }
 0x69d   : > { %v863_v33 = vpop.f32.mrb[17].mxu1  ;;  %v872_v39 = vadd.f32 %v2835_v32, %v3354_v30 }
 0x69e   : > { %v864_v34 = vadd.f32 %v863_v33, %v3354_v30  ;;  %v2836_v35 = vpop.f32.mrb[18].mxu1 }
 0x69f   : > { %v866_v38 = vpop.f32.mrb[19].mxu1  ;;  %v883_v43 = vsel %vm541_vm4, %v872_v39, -inf }
 0x6a0   : > { %v867_v40 = vadd.f32 %v866_v38, %v3354_v30  ;;  %v877_v41 = vsel %vm541_vm4, %v864_v34, -inf }
 0x6a1   : > { %878 = vmax.xlane.f32.xlu0 %v877_v41 }
 0x6a2   : > { %v880_v42 = vsel %vm541_vm4, %v867_v40, -inf }
 0x6a3   : > { %881 = vmax.xlane.f32.xlu1 %v880_v42 }
 0x6a5   : > { %884 = vmax.xlane.f32.xlu0 %v883_v43 }
 0x72e   : > { %v879_v44 = vpop.xlane.xlu0 %878 }
 0x72f   : > { %v886_v45 = vsub.f32 %v864_v34, %v879_v44 }
 0x730   : > { %v882_v46 = vpop.xlane.xlu1 %881 }
 0x731   : > { %v889_v47 = vmul.f32 1.442695, %v886_v45  ;;  %v887_v51 = vsub.f32 %v867_v40, %v882_v46 }
 0x732   : > { %v885_v52 = vpop.xlane.xlu0 %884 }
 0x733   : > { %3073 = vpow2.f32 %v889_v47  ;;  %v891_v53 = vmul.f32 1.442695, %v887_v51  ;;  %v888_v55 = vsub.f32 %v872_v39, %v885_v52 }
 0x735   : > { %3075 = vpow2.f32 %v891_v53  ;;  %v893_v56 = vmul.f32 1.442695, %v888_v55 }
 0x737   : > { %3077 = vpow2.f32 %v893_v56 }
 0x73d   : > { %v3074_v57 = vpop.eup %3073 }
 0x73e   : > { %v895_v58 = vsel %vm541_vm4, %v3074_v57, 0.0 }
 0x73f   : > { %v3076_v59 = vpop.eup %3075  ;;  %896 = vadd.xlane.f32.xlu0 %v895_v58 }
 0x740   : > { %v898_v61 = vsel %vm541_vm4, %v3076_v59, 0.0 }
 0x741   : > { %v3078_v60 = vpop.eup %3077 }
 0x742   : > { %v901_v62 = vsel %vm541_vm4, %v3078_v60, 0.0 }
 0x743   : > { %899 = vadd.xlane.f32.xlu0 %v898_v61  ;;  %902 = vadd.xlane.f32.xlu1 %v901_v62 }
 0x754   : > { %978 = vrot.lane.b32.xlu1 %v3320_v10, %s3197_s26 }
 0x758   : > { %972 = vrot.lane.b32.xlu1 %v3324_v16, %s3198_s28 }
 0x759   : > { %976 = vrot.lane.b32.xlu0 %v3324_v16, %s3197_s26 }
 0x75c   : > { %974 = vrot.lane.b32.xlu1 %v3320_v10, %s3198_s28 }
 0x7cc   : > { %v897_v63 = vpop.xlane.xlu0 %896 }
 0x7cd   : > { %3079 = vrcp.f32 %v897_v63 }
 0x7d0   : > { %v903_v0 = vpop.xlane.xlu1 %902  ;;  %v900_v1 = vpop.xlane.xlu0 %899 }
 0x7d1   : > { %3081 = vrcp.f32 %v903_v0 }
 0x7d2   : > { %3083 = vrcp.f32 %v900_v1 }
 0x7d4   : > { %v977_v2 = vpop.permute.xlu0 %976  ;;  %v979_v8 = vpop.permute.xlu1 %978 }
 0x7d5   : > { %2990 = vmatprep.subr.msk.bf16.mxu0 %vm480_vm2, %v977_v2  ;;  %v987_v10 = vsel %vm480_vm2, %v977_v2, 0  ;;  %v990_v21 = vsel %vm480_vm2, %v979_v8, 0 }
 0x7d7   : > { %v3080_v3 = vpop.eup %3079 }
 0x7d8   : > { %v905_v15 = vmul.f32 %v3080_v3, %v3074_v57  ;;  %v973_v20 = vpop.permute.xlu1 %972 }
 0x7db   : > { %v3082_v5 = vpop.eup %3081 }
 0x7dc   : > { %v3084_v6 = vpop.eup %3083  ;;  %v909_v7 = vmul.f32 %v3082_v5, %v3078_v60  ;;  %v975_v22 = vpop.permute.xlu1 %974 }
 0x7dd   : > { %v907_v17 = vmul.f32 %v3084_v6, %v3076_v59 }
 0x7de   : > { %v911_v16 = vpack.c.bf16 %v909_v7, %v909_v7 }
 0x7df   : > { %v910_v19 = vpack.c.bf16 %v907_v17, %v905_v15 }
 0x7e1   : > { %2841 = vmatprep.mubr.msk.bf16.mxu0 %vm541_vm4, %v910_v19 }
 0x7e2   : > { %2842 = vmatmul.mubr.msk.bf16.vlgmr.msra.gmra.mrb[8].mxu0 %vm541_vm4, %v911_v16 }
 0x7e3   : > { %2846 = vmatpush3.bf16.xpose.msra.mxu0 %v987_v10  ;;  %2849 = vmatprep.mubr.msk.bf16.mxu0 %vm480_vm2, %v973_v20 }
 0x7e4   : > { %2991 = vmatprep.subr.msk.bf16.mxu0 %vm480_vm2, %v979_v8 }
 0x7eb   : > { %2848 = vmatpush3.bf16.xpose.msra.mxu0 %v990_v21  ;;  %v3486_v21 = vsel %vm248_vm15, 1.0, %v3196_v9  ;;  %v1139_v9 = vsub.s32 3, %v3297_v48 }
 0x7f2   : > { %2850 = vmatmul.mubr.msk.bf16.vlgmr.msra.gmra.mrb[12].mxu0 %vm480_vm2, %v975_v22 }
 0x8b5   : > { %v2843_v25 = vpop.f32.mrb[8].mxu0 }
 0x8b6   : > { %v968_v26 = vmul.f32 %v2843_v25, %v3454_v23  ;;  %v952_v29 = vpop.f32.mrb[9].mxu0 }
 0x8b7   : > { %v966_v32 = vmul.f32 %v3454_v23, %v952_v29  ;;  %v2844_v33 = vpop.f32.mrb[10].mxu0 }
 0x8b8   : > { %v3459_v34 = vadd.f32 %v968_v26, %v3418_v24  ;;  %v955_v35 = vpop.f32.mrb[11].mxu0 }
 0x8b9   : > { %v3462_v38 = vadd.f32 %v966_v32, %v3421_v27  ;;  %v967_v39 = vmul.f32 %v3454_v23, %v955_v35 }
 0x8bb   : > { %v3466_v40 = vadd.f32 %v967_v39, %v3424_v31 }
 0x8c5   : > { %v2851_v41 = vpop.f32.mrb[12].mxu0 }
 0x8c6   : > { %v1026_v42 = vpop.f32.mrb[13].mxu0  ;;  %v1035_v46 = vadd.f32 %v2851_v41, %v3354_v30 }
 0x8c7   : > { %v1027_v43 = vadd.f32 %v1026_v42, %v3354_v30  ;;  %v2852_v44 = vpop.f32.mrb[14].mxu0 }
 0x8c8   : > { %v1029_v45 = vpop.f32.mrb[15].mxu0  ;;  %v1046_v51 = vsel %vm541_vm4, %v1035_v46, -inf  ;;  %v1140_v44 = vrot.slane %v3305_v50, %v1139_v9 }
 0x8c9   : > { %v1030_v24 = vadd.f32 %v1029_v45, %v3354_v30  ;;  %v1040_v47 = vsel %vm541_vm4, %v1027_v43, -inf }
 0x8ca   : > { %1041 = vmax.xlane.f32.xlu0 %v1040_v47 }
 0x8cb   : > { %v1043_v27 = vsel %vm541_vm4, %v1030_v24, -inf }
 0x8cc   : > { %1044 = vmax.xlane.f32.xlu1 %v1043_v27 }
 0x8ce   : > { %1047 = vmax.xlane.f32.xlu0 %v1046_v51 }
 0x957   : > { %v1042_v31 = vpop.xlane.xlu0 %1041 }
 0x958   : > { %v1049_v52 = vsub.f32 %v1027_v43, %v1042_v31 }
 0x959   : > { %v1045_v53 = vpop.xlane.xlu1 %1044 }
 0x95a   : > { %v1052_v55 = vmul.f32 1.442695, %v1049_v52  ;;  %v1050_v56 = vsub.f32 %v1030_v24, %v1045_v53 }
 0x95b   : > { %v1048_v57 = vpop.xlane.xlu0 %1047 }
 0x95c   : > { %3085 = vpow2.f32 %v1052_v55  ;;  %v1054_v58 = vmul.f32 1.442695, %v1050_v56  ;;  %v1051_v59 = vsub.f32 %v1035_v46, %v1048_v57 }
 0x95e   : > { %3087 = vpow2.f32 %v1054_v58  ;;  %v1056_v60 = vmul.f32 1.442695, %v1051_v59 }
 0x960   : > { %3089 = vpow2.f32 %v1056_v60 }
 0x966   : > { %v3086_v61 = vpop.eup %3085 }
 0x967   : > { %v1058_v62 = vsel %vm541_vm4, %v3086_v61, 0.0 }
 0x968   : > { %v3088_v63 = vpop.eup %3087  ;;  %1059 = vadd.xlane.f32.xlu0 %v1058_v62 }
 0x969   : > { %v1061_v1 = vsel %vm541_vm4, %v3088_v63, 0.0 }
 0x96a   : > { %v3090_v0 = vpop.eup %3089 }
 0x96b   : > { %v1064_v2 = vsel %vm541_vm4, %v3090_v0, 0.0 }
 0x96c   : > { %1062 = vadd.xlane.f32.xlu0 %v1061_v1  ;;  %1065 = vadd.xlane.f32.xlu1 %v1064_v2 }
 0x97d   : > { %1143 = vrot.lane.b32.xlu1 %v3290_v37, %s3199_s29 }
 0x982   : > { %1141 = vrot.lane.b32.xlu0 %v3285_v36, %s3199_s29 }
 0x9f5   : > { %v1060_v3 = vpop.xlane.xlu0 %1059 }
 0x9f6   : > { %3091 = vrcp.f32 %v1060_v3 }
 0x9f9   : > { %v1066_v5 = vpop.xlane.xlu1 %1065  ;;  %v1063_v6 = vpop.xlane.xlu0 %1062 }
 0x9fa   : > { %3093 = vrcp.f32 %v1066_v5  ;;  %v3035_v5 = vld [vmem:[%s3861_s3 + $0x4] ss:$8 sps:$4 sm:$0xff]  }
 0x9fb   : > { %3095 = vrcp.f32 %v1063_v6  ;;  %2869 = vmatprep.subr.bf16.mxu0 %v3035_v5  ;;  %v3036_v6 = vld [vmem:[%s3861_s3 + $0x14] ss:$8 sps:$4 sm:$0xff]  }
 0x9fc   : > { %2870 = vmatpush3.bf16.msra.mxu0 %v3035_v5 }
 0x9fd   : > { %v1142_v36 = vpop.permute.xlu0 %1141  ;;  %v1144_v37 = vpop.permute.xlu1 %1143  ;;  %2871 = vmatprep.subr.bf16.mxu0 %v3036_v6 }
 0x9fe   : > { %2861 = vmatprep.subr.bf16.mxu1 %v1142_v36 }
 0xa00   : > { %v3092_v7 = vpop.eup %3091  ;;  %2872 = vmatpush3.bf16.msra.mxu0 %v3036_v6 }
 0xa01   : > { %v1068_v16 = vmul.f32 %v3092_v7, %v3086_v61 }
 0xa04   : > { %v3094_v8 = vpop.eup %3093 }
 0xa05   : > { %v3096_v15 = vpop.eup %3095  ;;  %v1072_v17 = vmul.f32 %v3094_v8, %v3090_v0 }
 0xa06   : > { %v1070_v19 = vmul.f32 %v3096_v15, %v3088_v63 }
 0xa07   : > { %v1074_v10 = vpack.c.bf16 %v1072_v17, %v1072_v17 }
 0xa08   : > { %v1073_v20 = vpack.c.bf16 %v1070_v19, %v1068_v16 }
 0xa0a   : > { %2857 = vmatprep.mubr.msk.bf16.mxu1 %vm541_vm4, %v1073_v20 }
 0xa0b   : > { %2858 = vmatmul.mubr.msk.bf16.vlgmr.msra.gmra.mrb[20].mxu1 %vm541_vm4, %v1074_v10 }
 0xa0c   : > { %2862 = vmatpush3.bf16.msra.mxu1 %v1142_v36 }
 0xa0d   : > { %2863 = vmatprep.subr.bf16.mxu1 %v1144_v37 }
 0xa10   : > { %2864 = vmatpush3.bf16.msra.mxu1 %v1144_v37  ;;  %v1245_v37 = vsub.s32 4, %v3297_v48 }
 0xade   : > { %v2859_v22 = vpop.f32.mrb[20].mxu1 }
 0xadf   : > { %v1131_v25 = vmul.f32 %v2859_v22, %v3486_v21  ;;  %v1115_v26 = vpop.f32.mrb[21].mxu1  ;;  %v1246_v22 = vrot.slane %v3305_v50, %v1245_v37 }
 0xae0   : > { %v1129_v29 = vmul.f32 %v3486_v21, %v1115_v26  ;;  %v2860_v32 = vpop.f32.mrb[22].mxu1 }
 0xae1   : > { %v1134_v33 = vadd.f32 %v1131_v25, %v3459_v34  ;;  %v1118_v35 = vpop.f32.mrb[23].mxu1  ;;  %v1252_v25 = vsub.s32 5, %v3297_v48 }
 0xae2   : > { %v1132_v39 = vadd.f32 %v1129_v29, %v3462_v38  ;;  %v1130_v41 = vmul.f32 %v3486_v21, %v1118_v35 }
 0xae3   : > { %v1136_v43 = vpack.c.bf16 %v1134_v33, %v1134_v33 }
 0xae4   : > { %v1133_v28 = vadd.f32 %v1130_v41, %v3466_v40 }
 0xae6   : > { %v1135_v42 = vpack.c.bf16 %v1133_v28, %v1132_v39  ;;  %v1253_v39 = vrot.slane %v3305_v50, %v1252_v25 }
 0xae8   : > { %2865 = vmatprep.mubr.msk.bf16.mxu1 %vm345_vm1, %v1135_v42 }
 0xae9   : > { %2866 = vmatmul.mubr.msk.bf16.vlgmr.msra.gmra.mrb[24].mxu1 %vm345_vm1, %v1136_v43 }
 0xbbc   : > { %v2867_v34 = vpop.f32.mrb[24].mxu1 }
 0xbbd   : > { %v1187_v45 = vpop.f32.mrb[25].mxu1  ;;  %v1196_v47 = vadd.f32 %v2867_v34, %v1140_v44 }
 0xbbe   : > { %v1188_v46 = vadd.f32 %v1187_v45, %v1140_v44  ;;  %v2868_v38 = vpop.f32.mrb[26].mxu1 }
 0xbbf   : > { %v1190_v24 = vpop.f32.mrb[27].mxu1  ;;  %v3509_v52 = vadd.f32 %v1196_v47, %v3261_v11 }
 0xbc0   : > { %v3501_v40 = vadd.f32 %v1188_v46, %v3266_v14  ;;  %v1191_v27 = vadd.f32 %v1190_v24, %v1140_v44 }
 0xbc1   : > { %v1210_v55 = vsel %vm345_vm1, %v3509_v52, 0.0 }
 0xbc2   : > { %v3504_v51 = vadd.f32 %v1191_v27, %v3270_v18  ;;  %v1204_v31 = vsel %vm345_vm1, %v3501_v40, 0.0 }
 0xbc3   : > { %1205 = vadd.xlane.f32.xlu1 %v1204_v31 }
 0xbc4   : > { %v1207_v53 = vsel %vm345_vm1, %v3504_v51, 0.0 }
 0xbc5   : > { %1208 = vadd.xlane.f32.xlu0 %v1207_v53  ;;  %v1261_v53 = vsub.s32 6, %v3297_v48 }
 0xbc9   : > { %1211 = vadd.xlane.f32.xlu0 %v1210_v55  ;;  %v1262_v55 = vrot.slane %v3305_v50, %v1261_v53 }
 0xc50   : > { %v1206_v14 = vpop.xlane.xlu1 %1205 }
 0xc51   : > { %v1213_v56 = vmul.f32 0.03125, %v1206_v14 }
 0xc52   : > { %v1209_v57 = vpop.xlane.xlu0 %1208 }
 0xc53   : > { %v1216_v18 = vsub.f32 %v3501_v40, %v1213_v56  ;;  %v1214_v58 = vmul.f32 0.03125, %v1209_v57 }
 0xc55   : > { %v1217_v59 = vsub.f32 %v3504_v51, %v1214_v58  ;;  %v1219_v60 = vmul.f32 %v1216_v18, %v1216_v18 }
 0xc56   : > { %v1212_v61 = vpop.xlane.xlu0 %1211 }
 0xc57   : > { %v1215_v11 = vmul.f32 0.03125, %v1212_v61  ;;  %v1222_v62 = vsel %vm345_vm1, %v1219_v60, 0.0  ;;  %v1220_v63 = vmul.f32 %v1217_v59, %v1217_v59 }
 0xc58   : > { %1223 = vadd.xlane.f32.xlu1 %v1222_v62 }
 0xc59   : > { %v1218_v0 = vsub.f32 %v3509_v52, %v1215_v11  ;;  %v1225_v1 = vsel %vm345_vm1, %v1220_v63, 0.0 }
 0xc5a   : > { %1226 = vadd.xlane.f32.xlu0 %v1225_v1 }
 0xc5b   : > { %v1221_v2 = vmul.f32 %v1218_v0, %v1218_v0 }
 0xc5d   : > { %v1228_v3 = vsel %vm345_vm1, %v1221_v2, 0.0 }
 0xc5e   : > { %1229 = vadd.xlane.f32.xlu1 %v1228_v3 }
 0xc6f   : > { %1348 = vrot.lane.b32.xlu1 %v3036_v6, %s3193_s23 }
 0xc70   : > { %1346 = vrot.lane.b32.xlu0 %v3035_v5, %s3193_s23 }
 0xce5   : > { %v1224_v7 = vpop.xlane.xlu1 %1223 }
 0xce6   : > { %v1231_v8 = vmul.f32 0.03125, %v1224_v7 }
 0xce7   : > { %v1227_v15 = vpop.xlane.xlu0 %1226 }
 0xce8   : > { %v1234_v17 = vadd.f32 1e-06, %v1231_v8  ;;  %v1232_v16 = vmul.f32 0.03125, %v1227_v15 }
 0xcea   : > { %3097 = vrsqrt.f32 %v1234_v17  ;;  %v1235_v19 = vadd.f32 1e-06, %v1232_v16 }
 0xceb   : > { %v1230_v10 = vpop.xlane.xlu1 %1229  ;;  %v1347_v24 = vpop.permute.xlu0 %1346 }
 0xcec   : > { %3099 = vrsqrt.f32 %v1235_v19  ;;  %v1233_v20 = vmul.f32 0.03125, %v1230_v10  ;;  %v1358_v47 = vsel %vm1350_vm0, %v1347_v24, 0  ;;  %2993 = vmatprep.subr.msk.bf16.mxu1 %vm1350_vm0, %v1347_v24 }
 0xced   : > { %2878 = vmatpush3.bf16.xpose.msra.mxu1 %v1358_v47 }
 0xcee   : > { %v1236_v36 = vadd.f32 1e-06, %v1233_v20  ;;  %v1344_v20 = vsub.s32 7, %v3297_v48 }
 0xcef   : > { %v1349_v27 = vpop.permute.xlu1 %1348 }
 0xcf0   : > { %3101 = vrsqrt.f32 %v1236_v36  ;;  %v1361_v31 = vsel %vm1350_vm0, %v1349_v27, 0  ;;  %2994 = vmatprep.subr.msk.bf16.mxu1 %vm1350_vm0, %v1349_v27  ;;  %v1345_v36 = vrot.slane %v3305_v50, %v1344_v20 }
 0xcf4   : > { %v3098_v26 = vpop.eup %3097 }
 0xcf5   : > { %v1240_v29 = vmul.f32 %v3098_v26, %v1216_v18  ;;  %2880 = vmatpush3.bf16.xpose.msra.mxu1 %v1361_v31 }
 0xcf6   : > { %v3100_v32 = vpop.eup %3099 }
 0xcf7   : > { %v1241_v33 = vmul.f32 %v3100_v32, %v1217_v59  ;;  %v1247_v35 = vmul.f32 %v1246_v22, %v1240_v29 }
 0xcf9   : > { %v1248_v41 = vmul.f32 %v1246_v22, %v1241_v33  ;;  %v1254_v43 = vadd.f32 %v1253_v39, %v1247_v35 }
 0xcfa   : > { %v3102_v28 = vpop.eup %3101 }
 0xcfb   : > { %v1242_v42 = vmul.f32 %v3102_v28, %v1218_v0  ;;  %v1255_v44 = vadd.f32 %v1253_v39, %v1248_v41 }
 0xcfd   : > { %v1257_v34 = vpack.c.bf16 %v1255_v44, %v1254_v43  ;;  %v1249_v45 = vmul.f32 %v1246_v22, %v1242_v42 }
 0xcff   : > { %2873 = vmatprep.mubr.msk.bf16.mxu0 %vm345_vm1, %v1257_v34  ;;  %v1256_v46 = vadd.f32 %v1253_v39, %v1249_v45 }
 0xd01   : > { %v1258_v38 = vpack.c.bf16 %v1256_v46, %v1256_v46 }
 0xd03   : > { %2874 = vmatmul.mubr.msk.bf16.vlgmr.msra.gmra.mrb[16].mxu0 %vm345_vm1, %v1258_v38 }
 0xdd6   : > { %v2875_v14 = vpop.f32.mrb[16].mxu0 }
 0xdd7   : > { %v1320_v56 = vadd.f32 %v2875_v14, %v1262_v55  ;;  %v1311_v57 = vpop.f32.mrb[17].mxu0 }
 0xdd8   : > { %v1312_v18 = vadd.f32 %v1311_v57, %v1262_v55  ;;  %v2876_v58 = vpop.f32.mrb[18].mxu0 }
 0xdd9   : > { %v1330_v59 = vmul.f32 0.70710677, %v1320_v56  ;;  %v1314_v60 = vpop.f32.mrb[19].mxu0  ;;  %v1327_v5 = vmul.f32 0.5, %v1320_v56  ;;  %v3583_v58 = vld [vmem:[%s3861_s3 + $0x30] ss:$8 sps:$4 sm:$0xff]  }
 0xdda   : > { %v1328_v61 = vmul.f32 0.70710677, %v1312_v18  ;;  %v1315_v11 = vadd.f32 %v1314_v60, %v1262_v55  ;;  %v1325_v6 = vmul.f32 0.5, %v1312_v18  ;;  %v3577_v18 = vld [vmem:[%s3861_s3 + $0x20] ss:$8 sps:$4 sm:$0xff]  }
 0xddb   : > { %3103 = verf.f32 %v1330_v59  ;;  %2885 = vmatprep.subr.bf16.mxu0 %v3577_v18 }
 0xddc   : > { %3105 = verf.f32 %v1328_v61  ;;  %v1329_v62 = vmul.f32 0.70710677, %v1315_v11  ;;  %v1326_v7 = vmul.f32 0.5, %v1315_v11  ;;  %2886 = vmatpush3.bf16.msra.mxu0 %v3577_v18 }
 0xddd   : > { %2887 = vmatprep.subr.bf16.mxu0 %v3583_v58 }
 0xdde   : > { %3107 = verf.f32 %v1329_v62 }
 0xde0   : > { %2888 = vmatpush3.bf16.msra.mxu0 %v3583_v58 }
 0xde5   : > { %v3104_v63 = vpop.eup %3103 }
 0xde6   : > { %v3106_v0 = vpop.eup %3105  ;;  %v1336_v1 = vadd.f32 1.0, %v3104_v63 }
 0xde7   : > { %v1334_v2 = vadd.f32 1.0, %v3106_v0 }
 0xde8   : > { %v3108_v3 = vpop.eup %3107  ;;  %v1339_v15 = vmul.f32 %v1336_v1, %v1327_v5 }
 0xde9   : > { %v1335_v8 = vadd.f32 1.0, %v3108_v3  ;;  %v1337_v17 = vmul.f32 %v1334_v2, %v1325_v6  ;;  %v3591_v3 = vld [vmem:[%s3862_s4 + $0x8] sm:$0xff] }
 0xdea   : > { %v1341_v10 = vpack.c.bf16 %v1339_v15, %v1339_v15  ;;  %v1463_v5 = vrot.slane %v3591_v3, %v3300_v49 }
 0xdeb   : > { %v1338_v16 = vmul.f32 %v1335_v8, %v1326_v7 }
 0xded   : > { %v1340_v19 = vpack.c.bf16 %v1338_v16, %v1337_v17  ;;  %v1470_v16 = vrot.slane %v3591_v3, %v3310_v54 }
 0xdef   : > { %2881 = vmatprep.mubr.msk.bf16.mxu1 %vm1350_vm0, %v1340_v19 }
 0xdf0   : > { %2882 = vmatmul.mubr.msk.bf16.vlgmr.msra.gmra.mrb[28].mxu1 %vm1350_vm0, %v1341_v10 }
 0xec3   : > { %v2883_v22 = vpop.f32.mrb[28].mxu1 }
 0xec4   : > { %v1397_v26 = vpop.f32.mrb[29].mxu1  ;;  %v1406_v35 = vadd.f32 %v2883_v22, %v1345_v36 }
 0xec5   : > { %v1398_v29 = vadd.f32 %v1397_v26, %v1345_v36  ;;  %v2884_v32 = vpop.f32.mrb[30].mxu1 }
 0xec6   : > { %v1400_v33 = vpop.f32.mrb[31].mxu1  ;;  %v3562_v43 = vadd.f32 %v1406_v35, %v3509_v52 }
 0xec7   : > { %v3554_v39 = vadd.f32 %v1398_v29, %v3501_v40  ;;  %v1401_v41 = vadd.f32 %v1400_v33, %v1345_v36 }
 0xec8   : > { %v1427_v44 = vsel %vm345_vm1, %v3562_v43, 0.0 }
 0xec9   : > { %v3557_v28 = vadd.f32 %v1401_v41, %v3504_v51  ;;  %v1421_v42 = vsel %vm345_vm1, %v3554_v39, 0.0  ;;  %v1479_v41 = vrot.slane %v3591_v3, %v404_v4 }
 0xeca   : > { %1422 = vadd.xlane.f32.xlu1 %v1421_v42 }
 0xecb   : > { %v1424_v50 = vsel %vm345_vm1, %v3557_v28, 0.0 }
 0xecc   : > { %1425 = vadd.xlane.f32.xlu0 %v1424_v50 }
 0xed0   : > { %1428 = vadd.xlane.f32.xlu0 %v1427_v44 }
 0xf57   : > { %v1423_v40 = vpop.xlane.xlu1 %1422 }
 0xf58   : > { %v1430_v34 = vmul.f32 0.03125, %v1423_v40 }
 0xf59   : > { %v1426_v45 = vpop.xlane.xlu0 %1425 }
 0xf5a   : > { %v1433_v51 = vsub.f32 %v3554_v39, %v1430_v34  ;;  %v1431_v46 = vmul.f32 0.03125, %v1426_v45 }
 0xf5c   : > { %v1434_v38 = vsub.f32 %v3557_v28, %v1431_v46  ;;  %v1436_v24 = vmul.f32 %v1433_v51, %v1433_v51 }
 0xf5d   : > { %v1429_v47 = vpop.xlane.xlu0 %1428 }
 0xf5e   : > { %v1432_v52 = vmul.f32 0.03125, %v1429_v47  ;;  %v1439_v27 = vsel %vm345_vm1, %v1436_v24, 0.0  ;;  %v1437_v31 = vmul.f32 %v1434_v38, %v1434_v38 }
 0xf5f   : > { %1440 = vadd.xlane.f32.xlu1 %v1439_v27 }
 0xf60   : > { %v1435_v55 = vsub.f32 %v3562_v43, %v1432_v52  ;;  %v1442_v14 = vsel %vm345_vm1, %v1437_v31, 0.0 }
 0xf61   : > { %1443 = vadd.xlane.f32.xlu0 %v1442_v14 }
 0xf62   : > { %v1438_v56 = vmul.f32 %v1435_v55, %v1435_v55 }
 0xf64   : > { %v1445_v57 = vsel %vm345_vm1, %v1438_v56, 0.0 }
 0xf65   : > { %1446 = vadd.xlane.f32.xlu1 %v1445_v57 }
 0xfec   : > { %v1441_v59 = vpop.xlane.xlu1 %1440 }
 0xfed   : > { %v1448_v60 = vmul.f32 0.03125, %v1441_v59 }
 0xfee   : > { %v1444_v61 = vpop.xlane.xlu0 %1443 }
 0xfef   : > { %v1451_v11 = vadd.f32 1e-06, %v1448_v60  ;;  %v1449_v62 = vmul.f32 0.03125, %v1444_v61 }
 0xff1   : > { %3109 = vrsqrt.f32 %v1451_v11  ;;  %v1452_v63 = vadd.f32 1e-06, %v1449_v62 }
 0xff2   : > { %v1447_v0 = vpop.xlane.xlu1 %1446 }
 0xff3   : > { %3111 = vrsqrt.f32 %v1452_v63  ;;  %v1450_v1 = vmul.f32 0.03125, %v1447_v0 }
 0xff5   : > { %v1453_v2 = vadd.f32 1e-06, %v1450_v1 }
 0xff7   : > { %3113 = vrsqrt.f32 %v1453_v2 }
 0xffb   : > { %v3110_v6 = vpop.eup %3109 }
 0xffc   : > { %v1457_v7 = vmul.f32 %v3110_v6, %v1433_v51 }
 0xffd   : > { %v3112_v8 = vpop.eup %3111 }
 0xffe   : > { %v1458_v15 = vmul.f32 %v3112_v8, %v1434_v38  ;;  %v1464_v17 = vmul.f32 %v1463_v5, %v1457_v7 }
0x1000   : > { %v1465_v19 = vmul.f32 %v1463_v5, %v1458_v15  ;;  %v1471_v22 = vadd.f32 %v1470_v16, %v1464_v17 }
0x1001   : > { %v3114_v10 = vpop.eup %3113 }
0x1002   : > { %v1459_v36 = vmul.f32 %v3114_v10, %v1435_v55  ;;  %v1472_v26 = vadd.f32 %v1470_v16, %v1465_v19 }
0x1004   : > { %v1474_v29 = vpack.c.bf16 %v1472_v26, %v1471_v22  ;;  %v1466_v32 = vmul.f32 %v1463_v5, %v1459_v36 }
0x1006   : > { %2889 = vmatprep.mubr.msk.bf16.mxu0 %vm345_vm1, %v1474_v29  ;;  %v1473_v33 = vadd.f32 %v1470_v16, %v1466_v32 }
0x1008   : > { %v1475_v35 = vpack.c.bf16 %v1473_v33, %v1473_v33 }
0x100a   : > { %2890 = vmatmul.mubr.msk.bf16.vlgmr.msra.gmra.mrb[20].mxu0 %vm345_vm1, %v1475_v35 }
0x10dd   : > { %v2891_v42 = vpop.f32.mrb[20].mxu0 }
0x10de   : > { %v1541_v50 = vadd.f32 %v2891_v42, %v1479_v41  ;;  %v1532_v44 = vpop.f32.mrb[21].mxu0 }
0x10df   : > { %v2892_v40 = vpop.f32.mrb[22].mxu0  ;;  %v1533_v51 = vadd.f32 %v1532_v44, %v1479_v41 }
0x10e0   : > { %v3602_v34 = vpack.c.bf16 %v1541_v50, %v1541_v50  ;;  %v1535_v45 = vpop.f32.mrb[23].mxu0 }
0x10e1   : > { %v1536_v46 = vadd.f32 %v1535_v45, %v1479_v41 }
0x10e2   : > { %1552 = vrot.lane.b32.xlu1 %v3602_v34, %s3189_s19 }
0x10e3   : > { %v3606_v38 = vpack.c.bf16 %v1536_v46, %v1533_v51 }
0x10e5   : > { %1550 = vrot.lane.b32.xlu0 %v3606_v38, %s3189_s19  ;;  %2897 = vmatprep.mubr.msk.bf16.mxu0 %vm480_vm2, %v3606_v38 }
0x1154   : > { %v1553_v47 = vpop.permute.xlu1 %1552 }
0x1155   : > { %v1564_v52 = vsel %vm480_vm2, %v1553_v47, 0 }
0x1157   : > { %v1551_v4 = vpop.permute.xlu0 %1550 }
0x1158   : > { %v1561_v24 = vsel %vm480_vm2, %v1551_v4, 0  ;;  %2995 = vmatprep.subr.msk.bf16.mxu0 %vm480_vm2, %v1551_v4 }
0x1159   : > { %2894 = vmatpush3.bf16.xpose.msra.mxu0 %v1561_v24 }
0x115a   : > { %2996 = vmatprep.subr.msk.bf16.mxu0 %vm480_vm2, %v1553_v47 }
0x1161   : > { %2896 = vmatpush3.bf16.xpose.msra.mxu0 %v1564_v52 }
0x1168   : > { %2898 = vmatmul.mubr.msk.bf16.vlgmr.msra.gmra.mrb[24].mxu0 %vm480_vm2, %v3602_v34 }
0x123b   : > { %v2899_v27 = vpop.f32.mrb[24].mxu0 }
0x123c   : > { %v1600_v31 = vpop.f32.mrb[25].mxu0  ;;  %v1609_v60 = vadd.f32 %v2899_v27, %v3354_v30 }
0x123d   : > { %v1601_v55 = vadd.f32 %v1600_v31, %v3354_v30  ;;  %v2900_v14 = vpop.f32.mrb[26].mxu0 }
0x123e   : > { %v1603_v56 = vpop.f32.mrb[27].mxu0  ;;  %v1620_v11 = vsel %vm541_vm4, %v1609_v60, -inf }
0x123f   : > { %v1604_v57 = vadd.f32 %v1603_v56, %v3354_v30  ;;  %v1614_v59 = vsel %vm541_vm4, %v1601_v55, -inf }
0x1240   : > { %1615 = vmax.xlane.f32.xlu1 %v1614_v59 }
0x1241   : > { %v1617_v61 = vsel %vm541_vm4, %v1604_v57, -inf }
0x1242   : > { %1618 = vmax.xlane.f32.xlu0 %v1617_v61 }
0x1246   : > { %1621 = vmax.xlane.f32.xlu0 %v1620_v11 }
0x12cd   : > { %v1616_v62 = vpop.xlane.xlu1 %1615 }
0x12ce   : > { %v1623_v1 = vsub.f32 %v1601_v55, %v1616_v62 }
0x12cf   : > { %v1619_v63 = vpop.xlane.xlu0 %1618 }
0x12d0   : > { %v1624_v0 = vsub.f32 %v1604_v57, %v1619_v63  ;;  %v1626_v7 = vmul.f32 1.442695, %v1623_v1 }
0x12d2   : > { %v1628_v2 = vmul.f32 1.442695, %v1624_v0 }
0x12d3   : > { %v1622_v5 = vpop.xlane.xlu0 %1621 }
0x12d4   : > { %3115 = vpow2.f32 %v1628_v2  ;;  %v1625_v6 = vsub.f32 %v1609_v60, %v1622_v5 }
0x12d6   : > { %v1630_v8 = vmul.f32 1.442695, %v1625_v6 }
0x12d8   : > { %3117 = vpow2.f32 %v1630_v8 }
0x12d9   : > { %3119 = vpow2.f32 %v1626_v7 }
0x12de   : > { %v3116_v15 = vpop.eup %3115 }
0x12df   : > { %v1635_v17 = vsel %vm541_vm4, %v3116_v15, 0.0 }
0x12e0   : > { %1636 = vadd.xlane.f32.xlu0 %v1635_v17 }
0x12e2   : > { %v3118_v16 = vpop.eup %3117 }
0x12e3   : > { %v1638_v19 = vsel %vm541_vm4, %v3118_v16, 0.0  ;;  %v3120_v10 = vpop.eup %3119 }
0x12e4   : > { %1639 = vadd.xlane.f32.xlu1 %v1638_v19  ;;  %v1632_v36 = vsel %vm541_vm4, %v3120_v10, 0.0 }
0x12e8   : > { %1633 = vadd.xlane.f32.xlu1 %v1632_v36 }
0x12f6   : > { %1649 = vrot.lane.b32.xlu0 %v3606_v38, %s3193_s23 }
0x12f9   : > { %1651 = vrot.lane.b32.xlu1 %v3602_v34, %s3193_s23 }
0x12fa   : > { %1717 = vrot.lane.b32.xlu0 %v3606_v38, %s3191_s21 }
0x12fd   : > { %1721 = vrot.lane.b32.xlu1 %v3606_v38, %s3190_s20 }
0x1301   : > { %1723 = vrot.lane.b32.xlu1 %v3602_v34, %s3190_s20 }
0x1305   : > { %1719 = vrot.lane.b32.xlu1 %v3602_v34, %s3191_s21 }
0x136d   : > { %v1637_v22 = vpop.xlane.xlu0 %1636 }
0x1371   : > { %v3639_v26 = vpop.permute.xlu0 %1649  ;;  %v1640_v29 = vpop.xlane.xlu1 %1639 }
0x1372   : > { %2901 = vmatprep.subr.bf16.mxu1 %v3639_v26  ;;  %2917 = vmatprep.subr.bf16.mxu0 %v3639_v26  ;;  %3121 = vrcp.f32 %v1640_v29 }
0x1373   : > { %2902 = vmatpush3.bf16.msra.mxu1 %v3639_v26  ;;  %2918 = vmatpush3.bf16.msra.mxu0 %v3639_v26  ;;  %3123 = vrcp.f32 %v1637_v22 }
0x1375   : > { %v1634_v32 = vpop.xlane.xlu1 %1633  ;;  %v1718_v24 = vpop.permute.xlu0 %1717 }
0x1376   : > { %3125 = vrcp.f32 %v1634_v32 }
0x1379   : > { %v3645_v33 = vpop.permute.xlu1 %1651 }
0x137a   : > { %2997 = vmatprep.subr.msk.bf16.mxu1 %vm588_vm5, %v3645_v33  ;;  %3000 = vmatprep.subr.msk.bf16.mxu0 %vm588_vm5, %v3645_v33  ;;  %v3653_v35 = vsel %vm588_vm5, %v3645_v33, 0 }
0x137b   : > { %2904 = vmatpush3.bf16.msra.mxu1 %v3653_v35  ;;  %2920 = vmatpush3.bf16.msra.mxu0 %v3653_v35 }
0x137c   : > { %v3122_v41 = vpop.eup %3121 }
0x137d   : > { %v1722_v42 = vpop.permute.xlu1 %1721  ;;  %v3124_v50 = vpop.eup %3123  ;;  %v1646_v40 = vmul.f32 %v3122_v41, %v3118_v16 }
0x137e   : > { %2998 = vmatprep.subr.msk.bf16.mxu1 %vm480_vm2, %v1722_v42  ;;  %v1644_v51 = vmul.f32 %v3124_v50, %v3116_v15  ;;  %v1732_v47 = vsel %vm480_vm2, %v1722_v42, 0 }
0x137f   : > { %v1648_v4 = vpack.c.bf16 %v1646_v40, %v1646_v40 }
0x1380   : > { %v3126_v44 = vpop.eup %3125 }
0x1381   : > { %v1642_v45 = vmul.f32 %v3126_v44, %v3120_v10  ;;  %v1724_v52 = vpop.permute.xlu1 %1723 }
0x1382   : > { %v1735_v27 = vsel %vm480_vm2, %v1724_v52, 0 }
0x1383   : > { %v1647_v46 = vpack.c.bf16 %v1644_v51, %v1642_v45 }
0x1385   : > { %2905 = vmatprep.mubr.msk.bf16.mxu1 %vm541_vm4, %v1647_v46  ;;  %v1720_v31 = vpop.permute.xlu1 %1719 }
0x1386   : > { %2906 = vmatmul.mubr.msk.bf16.vlgmr.msra.gmra.mrb[32].mxu1 %vm541_vm4, %v1648_v4 }
0x1387   : > { %2910 = vmatpush3.bf16.xpose.msra.mxu1 %v1732_v47  ;;  %2913 = vmatprep.mubr.msk.bf16.mxu1 %vm480_vm2, %v1718_v24 }
0x1388   : > { %2999 = vmatprep.subr.msk.bf16.mxu1 %vm480_vm2, %v1724_v52 }
0x138f   : > { %2912 = vmatpush3.bf16.xpose.msra.mxu1 %v1735_v27 }
0x1390   : > { %2933 = vmatprep.subr.bf16.mxu1 %v3639_v26 }
0x1396   : > { %2914 = vmatmul.mubr.msk.bf16.vlgmr.msra.gmra.mrb[36].mxu1 %vm480_vm2, %v1720_v31 }
0x1397   : > { %2934 = vmatpush3.bf16.msra.mxu1 %v3639_v26 }
0x1398   : > { %3003 = vmatprep.subr.msk.bf16.mxu1 %vm588_vm5, %v3645_v33 }
0x139b   : > { %2936 = vmatpush3.bf16.msra.mxu1 %v3653_v35 }
0x1459   : > { %v3670_v55 = vpop.f32.mrb[32].mxu1 }
0x145a   : > { %v3672_v14 = vpop.f32.mrb[33].mxu1 }
0x145b   : > { %v2908_v56 = vpop.f32.mrb[34].mxu1 }
0x145c   : > { %v3674_v57 = vpop.f32.mrb[35].mxu1 }
0x1469   : > { %v2915_v59 = vpop.f32.mrb[36].mxu1 }
0x146a   : > { %v1771_v60 = vpop.f32.mrb[37].mxu1  ;;  %v1780_v63 = vadd.f32 %v2915_v59, %v3354_v30 }
0x146b   : > { %v1772_v61 = vadd.f32 %v1771_v60, %v3354_v30  ;;  %v2916_v11 = vpop.f32.mrb[38].mxu1 }
0x146c   : > { %v1774_v62 = vpop.f32.mrb[39].mxu1  ;;  %v1791_v5 = vsel %vm541_vm4, %v1780_v63, -inf }
0x146d   : > { %v1775_v0 = vadd.f32 %v1774_v62, %v3354_v30  ;;  %v1785_v1 = vsel %vm541_vm4, %v1772_v61, -inf }
0x146e   : > { %1786 = vmax.xlane.f32.xlu0 %v1785_v1 }
0x146f   : > { %v1788_v2 = vsel %vm541_vm4, %v1775_v0, -inf }
0x1470   : > { %1789 = vmax.xlane.f32.xlu1 %v1788_v2 }
0x1472   : > { %1792 = vmax.xlane.f32.xlu0 %v1791_v5  ;;  %v1711_v5 = vmul.f32 %v3409_v12, %v3672_v14 }
0x14fb   : > { %v1787_v6 = vpop.xlane.xlu0 %1786 }
0x14fc   : > { %v1794_v7 = vsub.f32 %v1772_v61, %v1787_v6 }
0x14fd   : > { %v1790_v8 = vpop.xlane.xlu1 %1789 }
0x14fe   : > { %v1797_v15 = vmul.f32 1.442695, %v1794_v7  ;;  %v1795_v17 = vsub.f32 %v1775_v0, %v1790_v8  ;;  %v1713_v0 = vmul.f32 %v3670_v55, %v3409_v12 }
0x14ff   : > { %v1793_v16 = vpop.xlane.xlu0 %1792 }
0x1500   : > { %3127 = vpow2.f32 %v1797_v15  ;;  %v1799_v19 = vmul.f32 1.442695, %v1795_v17  ;;  %v1796_v10 = vsub.f32 %v1780_v63, %v1793_v16 }
0x1502   : > { %3129 = vpow2.f32 %v1799_v19  ;;  %v1801_v36 = vmul.f32 1.442695, %v1796_v10 }
0x1504   : > { %3131 = vpow2.f32 %v1801_v36 }
0x150a   : > { %v3128_v22 = vpop.eup %3127 }
0x150b   : > { %v1803_v29 = vsel %vm541_vm4, %v3128_v22, 0.0 }
0x150c   : > { %v3130_v32 = vpop.eup %3129  ;;  %1804 = vadd.xlane.f32.xlu0 %v1803_v29 }
0x150d   : > { %v1806_v42 = vsel %vm541_vm4, %v3130_v32, 0.0 }
0x150e   : > { %v3132_v41 = vpop.eup %3131 }
0x150f   : > { %v1809_v50 = vsel %vm541_vm4, %v3132_v41, 0.0 }
0x1510   : > { %1807 = vadd.xlane.f32.xlu0 %v1806_v42  ;;  %1810 = vadd.xlane.f32.xlu1 %v1809_v50 }
0x1521   : > { %1886 = vrot.lane.b32.xlu1 %v3602_v34, %s3194_s24 }
0x1525   : > { %1880 = vrot.lane.b32.xlu1 %v3606_v38, %s3195_s25 }
0x1526   : > { %1884 = vrot.lane.b32.xlu0 %v3606_v38, %s3194_s24 }
0x1529   : > { %1882 = vrot.lane.b32.xlu1 %v3602_v34, %s3195_s25  ;;  %s226_s25 = scalar_lea.vmem %s3863_s5, %s2603_s27 }
0x1599   : > { %v1805_v44 = vpop.xlane.xlu0 %1804 }
0x159a   : > { %3133 = vrcp.f32 %v1805_v44 }
0x159d   : > { %v1811_v40 = vpop.xlane.xlu1 %1810  ;;  %v1808_v45 = vpop.xlane.xlu0 %1807 }
0x159e   : > { %3135 = vrcp.f32 %v1811_v40 }
0x159f   : > { %3137 = vrcp.f32 %v1808_v45 }
0x15a1   : > { %v1885_v51 = vpop.permute.xlu0 %1884  ;;  %v1887_v52 = vpop.permute.xlu1 %1886 }
0x15a2   : > { %3001 = vmatprep.subr.msk.bf16.mxu0 %vm480_vm2, %v1885_v51  ;;  %v1895_v60 = vsel %vm480_vm2, %v1885_v51, 0  ;;  %v1898_v11 = vsel %vm480_vm2, %v1887_v52, 0 }
0x15a4   : > { %v3134_v46 = vpop.eup %3133 }
0x15a5   : > { %v1813_v27 = vmul.f32 %v3134_v46, %v3128_v22  ;;  %v1881_v61 = vpop.permute.xlu1 %1880 }
0x15a8   : > { %v3136_v4 = vpop.eup %3135 }
0x15a9   : > { %v3138_v24 = vpop.eup %3137  ;;  %v1817_v47 = vmul.f32 %v3136_v4, %v3132_v41  ;;  %v1883_v62 = vpop.permute.xlu1 %1882 }
0x15aa   : > { %v1815_v31 = vmul.f32 %v3138_v24, %v3130_v32 }
0x15ab   : > { %v1819_v56 = vpack.c.bf16 %v1817_v47, %v1817_v47 }
0x15ac   : > { %v1818_v59 = vpack.c.bf16 %v1815_v31, %v1813_v27 }
0x15ae   : > { %2921 = vmatprep.mubr.msk.bf16.mxu0 %vm541_vm4, %v1818_v59 }
0x15af   : > { %2922 = vmatmul.mubr.msk.bf16.vlgmr.msra.gmra.mrb[28].mxu0 %vm541_vm4, %v1819_v56 }
0x15b0   : > { %2926 = vmatpush3.bf16.xpose.msra.mxu0 %v1895_v60  ;;  %2929 = vmatprep.mubr.msk.bf16.mxu0 %vm480_vm2, %v1881_v61 }
0x15b1   : > { %3002 = vmatprep.subr.msk.bf16.mxu0 %vm480_vm2, %v1887_v52 }
0x15b8   : > { %2928 = vmatpush3.bf16.xpose.msra.mxu0 %v1898_v11 }
0x15b9   : > { %2949 = vmatprep.subr.bf16.mxu0 %v3639_v26 }
0x15bf   : > { %2930 = vmatmul.mubr.msk.bf16.vlgmr.msra.gmra.mrb[32].mxu0 %vm480_vm2, %v1883_v62 }
0x15c0   : > { %2950 = vmatpush3.bf16.msra.mxu0 %v3639_v26 }
0x15c1   : > { %3006 = vmatprep.subr.msk.bf16.mxu0 %vm588_vm5, %v3645_v33  ;;  %v1712_v33 = vmul.f32 %v3409_v12, %v3674_v57 }
0x15c4   : > { %2952 = vmatpush3.bf16.msra.mxu0 %v3653_v35 }
0x1682   : > { %v2923_v63 = vpop.f32.mrb[28].mxu0 }
0x1683   : > { %v1876_v1 = vmul.f32 %v2923_v63, %v3412_v13  ;;  %v1860_v2 = vpop.f32.mrb[29].mxu0 }
0x1684   : > { %v1874_v6 = vmul.f32 %v3412_v13, %v1860_v2  ;;  %v2924_v7 = vpop.f32.mrb[30].mxu0 }
0x1685   : > { %v3712_v8 = vadd.f32 %v1876_v1, %v1713_v0  ;;  %v1863_v26 = vpop.f32.mrb[31].mxu0 }
0x1686   : > { %v3716_v35 = vadd.f32 %v1874_v6, %v1711_v5  ;;  %v1875_v15 = vmul.f32 %v3412_v13, %v1863_v26 }
0x1688   : > { %v3719_v55 = vadd.f32 %v1875_v15, %v1712_v33 }
0x1692   : > { %v2931_v17 = vpop.f32.mrb[32].mxu0 }
0x1693   : > { %v1934_v16 = vpop.f32.mrb[33].mxu0  ;;  %v1943_v36 = vadd.f32 %v2931_v17, %v3354_v30 }
0x1694   : > { %v1935_v19 = vadd.f32 %v1934_v16, %v3354_v30  ;;  %v2932_v14 = vpop.f32.mrb[34].mxu0 }
0x1695   : > { %v1937_v10 = vpop.f32.mrb[35].mxu0  ;;  %v1954_v13 = vsel %vm541_vm4, %v1943_v36, -inf }
0x1696   : > { %v1938_v22 = vadd.f32 %v1937_v10, %v3354_v30  ;;  %v1948_v29 = vsel %vm541_vm4, %v1935_v19, -inf }
0x1697   : > { %1949 = vmax.xlane.f32.xlu0 %v1948_v29 }
0x1698   : > { %v1951_v12 = vsel %vm541_vm4, %v1938_v22, -inf }
0x1699   : > { %1952 = vmax.xlane.f32.xlu1 %v1951_v12 }
0x169b   : > { %1955 = vmax.xlane.f32.xlu0 %v1954_v13 }
0x1724   : > { %v1950_v57 = vpop.xlane.xlu0 %1949 }
0x1725   : > { %v1957_v32 = vsub.f32 %v1935_v19, %v1950_v57 }
0x1726   : > { %v1953_v41 = vpop.xlane.xlu1 %1952 }
0x1727   : > { %v1960_v42 = vmul.f32 1.442695, %v1957_v32  ;;  %v1958_v50 = vsub.f32 %v1938_v22, %v1953_v41 }
0x1728   : > { %v1956_v44 = vpop.xlane.xlu0 %1955 }
0x1729   : > { %3139 = vpow2.f32 %v1960_v42  ;;  %v1962_v40 = vmul.f32 1.442695, %v1958_v50  ;;  %v1959_v45 = vsub.f32 %v1943_v36, %v1956_v44 }
0x172b   : > { %3141 = vpow2.f32 %v1962_v40  ;;  %v1964_v51 = vmul.f32 1.442695, %v1959_v45 }
0x172d   : > { %3143 = vpow2.f32 %v1964_v51 }
0x1733   : > { %v3140_v46 = vpop.eup %3139 }
0x1734   : > { %v1966_v4 = vsel %vm541_vm4, %v3140_v46, 0.0 }
0x1735   : > { %v3142_v24 = vpop.eup %3141  ;;  %1967 = vadd.xlane.f32.xlu0 %v1966_v4 }
0x1736   : > { %v1969_v52 = vsel %vm541_vm4, %v3142_v24, 0.0 }
0x1737   : > { %v3144_v47 = vpop.eup %3143 }
0x1738   : > { %v1972_v27 = vsel %vm541_vm4, %v3144_v47, 0.0 }
0x1739   : > { %1970 = vadd.xlane.f32.xlu0 %v1969_v52  ;;  %1973 = vadd.xlane.f32.xlu1 %v1972_v27 }
0x174a   : > { %2049 = vrot.lane.b32.xlu1 %v3602_v34, %s3197_s26 }
0x174e   : > { %2043 = vrot.lane.b32.xlu1 %v3606_v38, %s3198_s28 }
0x174f   : > { %2047 = vrot.lane.b32.xlu0 %v3606_v38, %s3197_s26 }
0x1752   : > { %2045 = vrot.lane.b32.xlu1 %v3602_v34, %s3198_s28 }
0x17c2   : > { %v1968_v31 = vpop.xlane.xlu0 %1967 }
0x17c3   : > { %3145 = vrcp.f32 %v1968_v31 }
0x17c6   : > { %v1974_v56 = vpop.xlane.xlu1 %1973  ;;  %v1971_v59 = vpop.xlane.xlu0 %1970 }
0x17c7   : > { %3147 = vrcp.f32 %v1974_v56 }
0x17c8   : > { %3149 = vrcp.f32 %v1971_v59 }
0x17ca   : > { %v2048_v60 = vpop.permute.xlu0 %2047  ;;  %v2050_v0 = vpop.permute.xlu1 %2049 }
0x17cb   : > { %3004 = vmatprep.subr.msk.bf16.mxu1 %vm480_vm2, %v2048_v60  ;;  %v2058_v34 = vsel %vm480_vm2, %v2048_v60, 0  ;;  %v2061_v7 = vsel %vm480_vm2, %v2050_v0, 0 }
0x17cd   : > { %v3146_v61 = vpop.eup %3145 }
0x17ce   : > { %v1976_v1 = vmul.f32 %v3146_v61, %v3140_v46  ;;  %v2044_v6 = vpop.permute.xlu1 %2043 }
0x17d1   : > { %v3148_v11 = vpop.eup %3147 }
0x17d2   : > { %v3150_v62 = vpop.eup %3149  ;;  %v1980_v63 = vmul.f32 %v3148_v11, %v3144_v47  ;;  %v2046_v26 = vpop.permute.xlu1 %2045 }
0x17d3   : > { %v1978_v2 = vmul.f32 %v3150_v62, %v3142_v24 }
0x17d4   : > { %v1982_v38 = vpack.c.bf16 %v1980_v63, %v1980_v63 }
0x17d5   : > { %v1981_v5 = vpack.c.bf16 %v1978_v2, %v1976_v1 }
0x17d7   : > { %2937 = vmatprep.mubr.msk.bf16.mxu1 %vm541_vm4, %v1981_v5 }
0x17d8   : > { %2938 = vmatmul.mubr.msk.bf16.vlgmr.msra.gmra.mrb[40].mxu1 %vm541_vm4, %v1982_v38 }
0x17d9   : > { %2942 = vmatpush3.bf16.xpose.msra.mxu1 %v2058_v34  ;;  %2945 = vmatprep.mubr.msk.bf16.mxu1 %vm480_vm2, %v2044_v6 }
0x17da   : > { %3005 = vmatprep.subr.msk.bf16.mxu1 %vm480_vm2, %v2050_v0 }
0x17e1   : > { %2944 = vmatpush3.bf16.xpose.msra.mxu1 %v2061_v7 }
0x17e8   : > { %2946 = vmatmul.mubr.msk.bf16.vlgmr.msra.gmra.mrb[44].mxu1 %vm480_vm2, %v2046_v26 }
0x18ab   : > { %v2939_v33 = vpop.f32.mrb[40].mxu1 }
0x18ac   : > { %v2039_v15 = vmul.f32 %v2939_v33, %v3454_v23  ;;  %v2023_v17 = vpop.f32.mrb[41].mxu1 }
0x18ad   : > { %v2037_v16 = vmul.f32 %v3454_v23, %v2023_v17  ;;  %v2940_v19 = vpop.f32.mrb[42].mxu1 }
0x18ae   : > { %v3749_v14 = vadd.f32 %v2039_v15, %v3712_v8  ;;  %v2026_v10 = vpop.f32.mrb[43].mxu1 }
0x18af   : > { %v3752_v36 = vadd.f32 %v2037_v16, %v3716_v35  ;;  %v2038_v22 = vmul.f32 %v3454_v23, %v2026_v10 }
0x18b1   : > { %v3756_v29 = vadd.f32 %v2038_v22, %v3719_v55 }
0x18bb   : > { %v2947_v12 = vpop.f32.mrb[44].mxu1 }
0x18bc   : > { %v2097_v13 = vpop.f32.mrb[45].mxu1  ;;  %v2106_v42 = vadd.f32 %v2947_v12, %v3354_v30 }
0x18bd   : > { %v2098_v57 = vadd.f32 %v2097_v13, %v3354_v30  ;;  %v2948_v32 = vpop.f32.mrb[46].mxu1 }
0x18be   : > { %v2100_v41 = vpop.f32.mrb[47].mxu1  ;;  %v2117_v23 = vsel %vm541_vm4, %v2106_v42, -inf }
0x18bf   : > { %v2101_v8 = vadd.f32 %v2100_v41, %v3354_v30  ;;  %v2111_v50 = vsel %vm541_vm4, %v2098_v57, -inf }
0x18c0   : > { %2112 = vmax.xlane.f32.xlu0 %v2111_v50 }
0x18c1   : > { %v2114_v35 = vsel %vm541_vm4, %v2101_v8, -inf }
0x18c2   : > { %2115 = vmax.xlane.f32.xlu1 %v2114_v35 }
0x18c4   : > { %2118 = vmax.xlane.f32.xlu0 %v2117_v23 }
0x194d   : > { %v2113_v55 = vpop.xlane.xlu0 %2112 }
0x194e   : > { %v2120_v44 = vsub.f32 %v2098_v57, %v2113_v55  ;;  %v2211_v57 = vrot.slane %v3591_v3, %v1139_v9 }
0x194f   : > { %v2116_v40 = vpop.xlane.xlu1 %2115 }
0x1950   : > { %v2123_v45 = vmul.f32 1.442695, %v2120_v44  ;;  %v2121_v51 = vsub.f32 %v2101_v8, %v2116_v40 }
0x1951   : > { %v2119_v46 = vpop.xlane.xlu0 %2118 }
0x1952   : > { %3151 = vpow2.f32 %v2123_v45  ;;  %v2125_v4 = vmul.f32 1.442695, %v2121_v51  ;;  %v2122_v24 = vsub.f32 %v2106_v42, %v2119_v46 }
0x1954   : > { %3153 = vpow2.f32 %v2125_v4  ;;  %v2127_v30 = vmul.f32 1.442695, %v2122_v24 }
0x1956   : > { %3155 = vpow2.f32 %v2127_v30 }
0x195c   : > { %v3152_v47 = vpop.eup %3151 }
0x195d   : > { %v2129_v52 = vsel %vm541_vm4, %v3152_v47, 0.0 }
0x195e   : > { %v3154_v27 = vpop.eup %3153  ;;  %2130 = vadd.xlane.f32.xlu0 %v2129_v52 }
0x195f   : > { %v2132_v56 = vsel %vm541_vm4, %v3154_v27, 0.0 }
0x1960   : > { %v3156_v31 = vpop.eup %3155 }
0x1961   : > { %v2135_v59 = vsel %vm541_vm4, %v3156_v31, 0.0 }
0x1962   : > { %2133 = vadd.xlane.f32.xlu0 %v2132_v56  ;;  %2136 = vadd.xlane.f32.xlu1 %v2135_v59  ;;  %v3041_v56 = vld [vmem:[%s3861_s3 + $0x24] ss:$8 sps:$4 sm:$0xff]   ;;  %v3042_v59 = vld [vmem:[%s3861_s3 + $0x34] ss:$8 sps:$4 sm:$0xff]  }
0x1963   : > { %2965 = vmatprep.subr.bf16.mxu1 %v3041_v56 }
0x1964   : > { %2966 = vmatpush3.bf16.msra.mxu1 %v3041_v56 }
0x1965   : > { %2967 = vmatprep.subr.bf16.mxu1 %v3042_v59 }
0x1968   : > { %2968 = vmatpush3.bf16.msra.mxu1 %v3042_v59 }
0x1973   : > { %2214 = vrot.lane.b32.xlu1 %v3583_v58, %s3199_s29 }
0x1978   : > { %2212 = vrot.lane.b32.xlu0 %v3577_v18, %s3199_s29 }
0x19eb   : > { %v2131_v60 = vpop.xlane.xlu0 %2130 }
0x19ec   : > { %3157 = vrcp.f32 %v2131_v60 }
0x19ef   : > { %v2137_v61 = vpop.xlane.xlu1 %2136  ;;  %v2134_v11 = vpop.xlane.xlu0 %2133 }
0x19f0   : > { %3159 = vrcp.f32 %v2137_v61 }
0x19f1   : > { %3161 = vrcp.f32 %v2134_v11 }
0x19f3   : > { %v2213_v58 = vpop.permute.xlu0 %2212  ;;  %v2215_v18 = vpop.permute.xlu1 %2214 }
0x19f4   : > { %2957 = vmatprep.subr.bf16.mxu0 %v2213_v58 }
0x19f6   : > { %v3158_v62 = vpop.eup %3157 }
0x19f7   : > { %v2139_v2 = vmul.f32 %v3158_v62, %v3152_v47 }
0x19fa   : > { %v3160_v63 = vpop.eup %3159 }
0x19fb   : > { %v3162_v0 = vpop.eup %3161  ;;  %v2143_v1 = vmul.f32 %v3160_v63, %v3156_v31 }
0x19fc   : > { %v2141_v38 = vmul.f32 %v3162_v0, %v3154_v27 }
0x19fd   : > { %v2145_v5 = vpack.c.bf16 %v2143_v1, %v2143_v1 }
0x19fe   : > { %v2144_v34 = vpack.c.bf16 %v2141_v38, %v2139_v2 }
0x1a00   : > { %2953 = vmatprep.mubr.msk.bf16.mxu0 %vm541_vm4, %v2144_v34 }
0x1a01   : > { %2954 = vmatmul.mubr.msk.bf16.vlgmr.msra.gmra.mrb[36].mxu0 %vm541_vm4, %v2145_v5  ;;  %v2317_v5 = vrot.slane %v3591_v3, %v1245_v37 }
0x1a02   : > { %2958 = vmatpush3.bf16.msra.mxu0 %v2213_v58 }
0x1a03   : > { %2959 = vmatprep.subr.bf16.mxu0 %v2215_v18 }
0x1a06   : > { %2960 = vmatpush3.bf16.msra.mxu0 %v2215_v18 }
0x1ad4   : > { %v2955_v6 = vpop.f32.mrb[36].mxu0 }
0x1ad5   : > { %v2202_v7 = vmul.f32 %v2955_v6, %v3486_v21  ;;  %v2186_v26 = vpop.f32.mrb[37].mxu0 }
0x1ad6   : > { %v2200_v33 = vmul.f32 %v3486_v21, %v2186_v26  ;;  %v2956_v15 = vpop.f32.mrb[38].mxu0  ;;  %v2324_v26 = vrot.slane %v3591_v3, %v1252_v25 }
0x1ad7   : > { %v2205_v17 = vadd.f32 %v2202_v7, %v3749_v14  ;;  %v2189_v16 = vpop.f32.mrb[39].mxu0 }
0x1ad8   : > { %v2203_v19 = vadd.f32 %v2200_v33, %v3752_v36  ;;  %v2201_v10 = vmul.f32 %v3486_v21, %v2189_v16 }
0x1ad9   : > { %v2207_v13 = vpack.c.bf16 %v2205_v17, %v2205_v17 }
0x1ada   : > { %v2204_v22 = vadd.f32 %v2201_v10, %v3756_v29 }
0x1adc   : > { %v2206_v12 = vpack.c.bf16 %v2204_v22, %v2203_v19 }
0x1ade   : > { %2961 = vmatprep.mubr.msk.bf16.mxu0 %vm345_vm1, %v2206_v12 }
0x1adf   : > { %2962 = vmatmul.mubr.msk.bf16.vlgmr.msra.gmra.mrb[40].mxu0 %vm345_vm1, %v2207_v13 }
0x1bb2   : > { %v2963_v32 = vpop.f32.mrb[40].mxu0 }
0x1bb3   : > { %v2258_v41 = vpop.f32.mrb[41].mxu0  ;;  %v2267_v36 = vadd.f32 %v2963_v32, %v2211_v57 }
0x1bb4   : > { %v2259_v14 = vadd.f32 %v2258_v41, %v2211_v57  ;;  %v2964_v42 = vpop.f32.mrb[42].mxu0  ;;  %v2333_v41 = vrot.slane %v3591_v3, %v1261_v53 }
0x1bb5   : > { %v2261_v8 = vpop.f32.mrb[43].mxu0  ;;  %v3793_v23 = vadd.f32 %v2267_v36, %v3562_v43 }
0x1bb6   : > { %v3785_v21 = vadd.f32 %v2259_v14, %v3554_v39  ;;  %v2262_v29 = vadd.f32 %v2261_v8, %v2211_v57 }
0x1bb7   : > { %v2281_v55 = vsel %vm345_vm1, %v3793_v23, 0.0 }
0x1bb8   : > { %v3788_v50 = vadd.f32 %v2262_v29, %v3557_v28  ;;  %v2275_v35 = vsel %vm345_vm1, %v3785_v21, 0.0 }
0x1bb9   : > { %2276 = vadd.xlane.f32.xlu1 %v2275_v35 }
0x1bba   : > { %v2278_v9 = vsel %vm345_vm1, %v3788_v50, 0.0 }
0x1bbb   : > { %2279 = vadd.xlane.f32.xlu0 %v2278_v9 }
0x1bbf   : > { %2282 = vadd.xlane.f32.xlu0 %v2281_v55 }
0x1c46   : > { %v2277_v39 = vpop.xlane.xlu1 %2276 }
0x1c47   : > { %v2284_v44 = vmul.f32 0.03125, %v2277_v39 }
0x1c48   : > { %v2280_v40 = vpop.xlane.xlu0 %2279 }
0x1c49   : > { %v2287_v28 = vsub.f32 %v3785_v21, %v2284_v44  ;;  %v2285_v45 = vmul.f32 0.03125, %v2280_v40 }
0x1c4b   : > { %v2288_v51 = vsub.f32 %v3788_v50, %v2285_v45  ;;  %v2290_v46 = vmul.f32 %v2287_v28, %v2287_v28 }
0x1c4c   : > { %v2283_v4 = vpop.xlane.xlu0 %2282 }
0x1c4d   : > { %v2286_v43 = vmul.f32 0.03125, %v2283_v4  ;;  %v2293_v24 = vsel %vm345_vm1, %v2290_v46, 0.0  ;;  %v2291_v30 = vmul.f32 %v2288_v51, %v2288_v51 }
0x1c4e   : > { %2294 = vadd.xlane.f32.xlu1 %v2293_v24 }
0x1c4f   : > { %v2289_v47 = vsub.f32 %v3793_v23, %v2286_v43  ;;  %v2296_v52 = vsel %vm345_vm1, %v2291_v30, 0.0 }
0x1c50   : > { %2297 = vadd.xlane.f32.xlu0 %v2296_v52 }
0x1c51   : > { %v2292_v27 = vmul.f32 %v2289_v47, %v2289_v47 }
0x1c53   : > { %v2299_v31 = vsel %vm345_vm1, %v2292_v27, 0.0 }
0x1c54   : > { %2300 = vadd.xlane.f32.xlu1 %v2299_v31 }
0x1c65   : > { %2419 = vrot.lane.b32.xlu1 %v3042_v59, %s3193_s23 }
0x1c66   : > { %2417 = vrot.lane.b32.xlu0 %v3041_v56, %s3193_s23  ;;  %v2416_v56 = vrot.slane %v3591_v3, %v1344_v20 }
0x1cdb   : > { %v2295_v60 = vpop.xlane.xlu1 %2294 }
0x1cdc   : > { %v2302_v61 = vmul.f32 0.03125, %v2295_v60 }
0x1cdd   : > { %v2298_v11 = vpop.xlane.xlu0 %2297 }
0x1cde   : > { %v2305_v62 = vadd.f32 1e-06, %v2302_v61  ;;  %v2303_v63 = vmul.f32 0.03125, %v2298_v11 }
0x1ce0   : > { %3163 = vrsqrt.f32 %v2305_v62  ;;  %v2306_v0 = vadd.f32 1e-06, %v2303_v63 }
0x1ce1   : > { %v2301_v1 = vpop.xlane.xlu1 %2300  ;;  %v2418_v13 = vpop.permute.xlu0 %2417 }
0x1ce2   : > { %3165 = vrsqrt.f32 %v2306_v0  ;;  %v2304_v2 = vmul.f32 0.03125, %v2301_v1  ;;  %v2428_v57 = vsel %vm1350_vm0, %v2418_v13, 0  ;;  %3007 = vmatprep.subr.msk.bf16.mxu0 %vm1350_vm0, %v2418_v13 }
0x1ce3   : > { %2974 = vmatpush3.bf16.xpose.msra.mxu0 %v2428_v57 }
0x1ce4   : > { %v2307_v38 = vadd.f32 1e-06, %v2304_v2 }
0x1ce5   : > { %v2420_v25 = vpop.permute.xlu1 %2419 }
0x1ce6   : > { %3167 = vrsqrt.f32 %v2307_v38  ;;  %v2431_v32 = vsel %vm1350_vm0, %v2420_v25, 0  ;;  %3008 = vmatprep.subr.msk.bf16.mxu0 %vm1350_vm0, %v2420_v25 }
0x1cea   : > { %v3164_v34 = vpop.eup %3163 }
0x1ceb   : > { %v2311_v58 = vmul.f32 %v3164_v34, %v2287_v28  ;;  %2976 = vmatpush3.bf16.xpose.msra.mxu0 %v2431_v32 }
0x1cec   : > { %v3166_v18 = vpop.eup %3165 }
0x1ced   : > { %v2312_v6 = vmul.f32 %v3166_v18, %v2288_v51  ;;  %v2318_v7 = vmul.f32 %v2317_v5, %v2311_v58 }
0x1cef   : > { %v2319_v33 = vmul.f32 %v2317_v5, %v2312_v6  ;;  %v2325_v16 = vadd.f32 %v2324_v26, %v2318_v7 }
0x1cf0   : > { %v3168_v15 = vpop.eup %3167 }
0x1cf1   : > { %v2313_v17 = vmul.f32 %v3168_v15, %v2289_v47  ;;  %v2326_v19 = vadd.f32 %v2324_v26, %v2319_v33 }
0x1cf3   : > { %v2328_v10 = vpack.c.bf16 %v2326_v19, %v2325_v16  ;;  %v2320_v22 = vmul.f32 %v2317_v5, %v2313_v17 }
0x1cf5   : > { %2969 = vmatprep.mubr.msk.bf16.mxu1 %vm345_vm1, %v2328_v10  ;;  %v2327_v12 = vadd.f32 %v2324_v26, %v2320_v22 }
0x1cf7   : > { %v2329_v37 = vpack.c.bf16 %v2327_v12, %v2327_v12 }
0x1cf9   : > { %2970 = vmatmul.mubr.msk.bf16.vlgmr.msra.gmra.mrb[48].mxu1 %vm345_vm1, %v2329_v37 }
0x1dcc   : > { %v2971_v14 = vpop.f32.mrb[48].mxu1 }
0x1dcd   : > { %v2391_v42 = vadd.f32 %v2971_v14, %v2333_v41  ;;  %v2382_v8 = vpop.f32.mrb[49].mxu1  ;;  %v2675_v14 = vld [vmem:[%s3862_s4 + $0x10] sm:$0xff] }
0x1dce   : > { %v2383_v36 = vadd.f32 %v2382_v8, %v2333_v41  ;;  %v2972_v29 = vpop.f32.mrb[50].mxu1 }
0x1dcf   : > { %v2401_v35 = vmul.f32 0.70710677, %v2391_v42  ;;  %v2385_v9 = vpop.f32.mrb[51].mxu1  ;;  %v2398_v4 = vmul.f32 0.5, %v2391_v42  ;;  %v2528_v42 = vrot.slane %v2675_v14, %v3300_v49 }
0x1dd0   : > { %v2399_v55 = vmul.f32 0.70710677, %v2383_v36  ;;  %v2386_v39 = vadd.f32 %v2385_v9, %v2333_v41  ;;  %v2396_v53 = vmul.f32 0.5, %v2383_v36  ;;  %v2535_v36 = vrot.slane %v2675_v14, %v3310_v54 }
0x1dd1   : > { %3169 = verf.f32 %v2401_v35 }
0x1dd2   : > { %3171 = verf.f32 %v2399_v55  ;;  %v2400_v44 = vmul.f32 0.70710677, %v2386_v39  ;;  %v2397_v43 = vmul.f32 0.5, %v2386_v39 }
0x1dd4   : > { %3173 = verf.f32 %v2400_v44 }
0x1ddb   : > { %v3170_v40 = vpop.eup %3169 }
0x1ddc   : > { %v3172_v28 = vpop.eup %3171  ;;  %v2407_v45 = vadd.f32 1.0, %v3170_v40 }
0x1ddd   : > { %v2405_v51 = vadd.f32 1.0, %v3172_v28 }
0x1dde   : > { %v3174_v46 = vpop.eup %3173  ;;  %v2410_v30 = vmul.f32 %v2407_v45, %v2398_v4 }
0x1ddf   : > { %v2406_v24 = vadd.f32 1.0, %v3174_v46  ;;  %v2408_v47 = vmul.f32 %v2405_v51, %v2396_v53 }
0x1de0   : > { %v2412_v31 = vpack.c.bf16 %v2410_v30, %v2410_v30 }
0x1de1   : > { %v2409_v52 = vmul.f32 %v2406_v24, %v2397_v43 }
0x1de3   : > { %v2411_v27 = vpack.c.bf16 %v2409_v52, %v2408_v47 }
0x1de5   : > { %2977 = vmatprep.mubr.msk.bf16.mxu0 %vm1350_vm0, %v2411_v27 }
0x1de6   : > { %2978 = vmatmul.mubr.msk.bf16.vlgmr.msra.gmra.mrb[44].mxu0 %vm1350_vm0, %v2412_v31 }
0x1eb9   : > { %v2979_v59 = vpop.f32.mrb[44].mxu0 }
0x1eba   : > { %v2467_v60 = vpop.f32.mrb[45].mxu0  ;;  %v2476_v63 = vadd.f32 %v2979_v59, %v2416_v56 }
0x1ebb   : > { %v2468_v61 = vadd.f32 %v2467_v60, %v2416_v56  ;;  %v2980_v11 = vpop.f32.mrb[46].mxu0 }
0x1ebc   : > { %v2470_v62 = vpop.f32.mrb[47].mxu0  ;;  %v2483_v5 = vadd.f32 %v2476_v63, %v3793_v23 }
0x1ebd   : > { %v2481_v0 = vadd.f32 %v2468_v61, %v3785_v21  ;;  %v2471_v1 = vadd.f32 %v2470_v62, %v2416_v56 }
0x1ebe   : > { %v2492_v20 = vsel %vm345_vm1, %v2483_v5, 0.0 }
0x1ebf   : > { %v2482_v2 = vadd.f32 %v2471_v1, %v3788_v50  ;;  %v2486_v38 = vsel %vm345_vm1, %v2481_v0, 0.0 }
0x1ec0   : > { %2487 = vadd.xlane.f32.xlu1 %v2486_v38 }
0x1ec1   : > { %v2489_v48 = vsel %vm345_vm1, %v2482_v2, 0.0 }
0x1ec2   : > { %2490 = vadd.xlane.f32.xlu0 %v2489_v48 }
0x1ec6   : > { %2493 = vadd.xlane.f32.xlu0 %v2492_v20 }
0x1f4d   : > { %v2488_v3 = vpop.xlane.xlu1 %2487 }
0x1f4e   : > { %v2495_v34 = vmul.f32 0.03125, %v2488_v3 }
0x1f4f   : > { %v2491_v58 = vpop.xlane.xlu0 %2490 }
0x1f50   : > { %v2498_v18 = vsub.f32 %v2481_v0, %v2495_v34  ;;  %v2496_v6 = vmul.f32 0.03125, %v2491_v58 }
0x1f52   : > { %v2499_v21 = vsub.f32 %v2482_v2, %v2496_v6  ;;  %v2501_v7 = vmul.f32 %v2498_v18, %v2498_v18 }
0x1f53   : > { %v2494_v26 = vpop.xlane.xlu0 %2493 }
0x1f54   : > { %v2497_v50 = vmul.f32 0.03125, %v2494_v26  ;;  %v2504_v33 = vsel %vm345_vm1, %v2501_v7, 0.0  ;;  %v2502_v15 = vmul.f32 %v2499_v21, %v2499_v21 }
0x1f55   : > { %2505 = vadd.xlane.f32.xlu1 %v2504_v33 }
0x1f56   : > { %v2500_v23 = vsub.f32 %v2483_v5, %v2497_v50  ;;  %v2507_v17 = vsel %vm345_vm1, %v2502_v15, 0.0 }
0x1f57   : > { %2508 = vadd.xlane.f32.xlu0 %v2507_v17 }
0x1f58   : > { %v2503_v16 = vmul.f32 %v2500_v23, %v2500_v23 }
0x1f5a   : > { %v2510_v19 = vsel %vm345_vm1, %v2503_v16, 0.0 }
0x1f5b   : > { %2511 = vadd.xlane.f32.xlu1 %v2510_v19 }
0x1fe2   : > { %v2506_v10 = vpop.xlane.xlu1 %2505 }
0x1fe3   : > { %v2513_v22 = vmul.f32 0.03125, %v2506_v10 }
0x1fe4   : > { %v2509_v12 = vpop.xlane.xlu0 %2508 }
0x1fe5   : > { %v2516_v37 = vadd.f32 1e-06, %v2513_v22  ;;  %v2514_v13 = vmul.f32 0.03125, %v2509_v12 }
0x1fe7   : > { %3175 = vrsqrt.f32 %v2516_v37  ;;  %v2517_v57 = vadd.f32 1e-06, %v2514_v13 }
0x1fe8   : > { %v2512_v25 = vpop.xlane.xlu1 %2511 }
0x1fe9   : > { %3177 = vrsqrt.f32 %v2517_v57  ;;  %v2515_v32 = vmul.f32 0.03125, %v2512_v25 }
0x1feb   : > { %v2518_v41 = vadd.f32 1e-06, %v2515_v32 }
0x1fed   : > { %3179 = vrsqrt.f32 %v2518_v41 }
0x1ff1   : > { %v3176_v8 = vpop.eup %3175 }
0x1ff2   : > { %v2522_v29 = vmul.f32 %v3176_v8, %v2498_v18 }
0x1ff3   : > { %v3178_v35 = vpop.eup %3177 }
0x1ff4   : > { %v2529_v9 = vmul.f32 %v2528_v42, %v2522_v29  ;;  %v2523_v55 = vmul.f32 %v3178_v35, %v2499_v21 }
0x1ff6   : > { %v2536_v39 = vadd.f32 %v2535_v36, %v2529_v9  ;;  %v2530_v44 = vmul.f32 %v2528_v42, %v2523_v55 }
0x1ff7   : > { %v3180_v40 = vpop.eup %3179 }
0x1ff8   : > { %2539 = vst.msk [vmem:[%s226_s25] sm:$0xff] %vm345_vm1, %v2536_v39  ;;  %v2537_v28 = vadd.f32 %v2535_v36, %v2530_v44  ;;  %v2524_v45 = vmul.f32 %v3180_v40, %v2500_v23 }
0x1ffa   : > { %2540 = vst.msk [vmem:[%s226_s25 + $0x8] sm:$0xff] %vm345_vm1, %v2537_v28  ;;  %v2531_v49 = vmul.f32 %v2528_v42, %v2524_v45 }
0x1ffc   : > { %v2538_v54 = vadd.f32 %v2535_v36, %v2531_v49 }
0x1ffe   : > { %2541 = vst.msk [vmem:[%s226_s25 + $0x10] sm:$0xff] %vm345_vm1, %v2538_v54 }
0x1fff PF: > { %s15_s18 = sadd.s32 1, %s3187_s18  }
0x2000   : > { %p12_p4 = scmp.ge.s32.totalorder %s15_s18, 4  }
0x2002   :  { %14 = sbr.rel (!%p12_p4) target bundleno = 1 (0x1), region = 73 }

</bundles_post_ra>
